<compile_context>
chip_gen: v7x
topology: tpu7x:2x2x1
jax: 0.10.0
libtpu: 0.0.40
codegen_flags: <defaults>
</compile_context>

<pallas_src>
import jax
import jax.numpy as jnp
import numpy as np
from jax.experimental import pallas as pl
from jax.experimental.pallas import tpu as pltpu


# Static network geometry implied by the PyTorch module.
_K1, _K2, _K3, _K4, _K5 = 5, 3, 3, 3, 10
_C1, _C2, _C3, _C4, _C5, _CF = 16, 16, 16, 16, 32, 8
_L_IN = 100
_L1 = 96           # conv1 output length (stride 1)
_L2 = 32           # conv2 output length (stride 3)
_L3 = 30           # conv3 real output length (stride 1)
_L4 = 10           # conv4 real output length (stride 3)
_L3P = _L2         # conv3 computed at 32 positions (rows 30,31 are padding)
_L4P = 16          # conv4 computed at 16 positions (rows 10..15 are padding)
_H2_PAD = 8        # zero tail rows on the h2 scratch (conv3 reads 2 past end)


# ----------------------------------------------------------------------------
# Fused kernel: conv1..conv5 (+ReLU) and fc2 on VMEM-resident activations.
# ----------------------------------------------------------------------------
def _rwhar_fused_kernel(x_ref, w1_ref, b1_ref, w2_ref, b2_ref, w3_ref, b3_ref,
                        w4_ref, b4_ref, w5_ref, b5_ref, wf_ref, bf_ref,
                        o_ref, h1_ref, h2_ref, h3_ref, h4_ref):
    f32, bf16 = jnp.float32, jnp.bfloat16
    bb = x_ref.shape[0]          # batch block handled by this grid step
    c_pad = x_ref.shape[2]       # channel-padded C_in (multiple of 8)

    def mm(a, w):
        # 2-D MXU matmul: bf16 operands, f32 accumulation.
        return jnp.dot(a.astype(bf16), w, preferred_element_type=f32)

    def relu_bias(acc, b_ref):
        return jnp.maximum(acc + b_ref[...], 0.0)

    # ---- conv1 (k=5, s=1): 5 tap-shifted matmuls with M = bb*96 -------------
    def x_tap(tap):
        # (bb, 96, c_pad) slice; 96 is sublane-aligned so the merge is free.
        return x_ref[:, pl.ds(tap, _L1), :].reshape(bb * _L1, c_pad)

    acc = mm(x_tap(0), w1_ref[0])
    for tap in range(1, _K1):
        acc = acc + mm(x_tap(tap), w1_ref[tap])
    h1_ref[...] = relu_bias(acc, b1_ref)                      # (bb*96, 16) f32

    # ---- conv2 (k=3, s=3): stride-3 row selection straight from VMEM --------
    acc = mm(h1_ref[pl.ds(0, bb * _L2, stride=3), :], w2_ref[0])
    for tap in range(1, _K2):
        acc = acc + mm(h1_ref[pl.ds(tap, bb * _L2, stride=3), :], w2_ref[tap])
    h2_ref[pl.ds(0, bb * _L2), :] = relu_bias(acc, b2_ref)    # (bb*32, 16)
    h2_ref[pl.ds(bb * _L2, _H2_PAD), :] = jnp.zeros((_H2_PAD, _C2), f32)

    # ---- conv3 (k=3, s=1): flat shifted reads over the whole block ----------
    # Output rows 30,31 of every sample mix neighbouring samples / the zero
    # tail; they are finite junk and are never consumed by a real conv4 row.
    acc = mm(h2_ref[pl.ds(0, bb * _L3P), :], w3_ref[0])
    for tap in range(1, _K3):
        acc = acc + mm(h2_ref[pl.ds(tap, bb * _L3P), :], w3_ref[tap])
    h3 = relu_bias(acc, b3_ref)                               # (bb*32, 16)
    h3_ref[:, 0:_L3P, :] = h3.reshape(bb, _L3P, _C3)
    h3_ref[:, _L3P:, :] = jnp.zeros((bb, 3 * _L4P - _L3P, _C3), f32)

    # ---- conv4 (k=3, s=3): computed at 16 positions, only 0..9 are real -----
    def h3_tap(tap):
        v = h3_ref[:, pl.ds(tap, _L4P, stride=3), :]          # (bb, 16, 16)
        return v.reshape(bb * _L4P, _C3)

    acc = mm(h3_tap(0), w4_ref[0])
    for tap in range(1, _K4):
        acc = acc + mm(h3_tap(tap), w4_ref[tap])
    h4_ref[...] = relu_bias(acc, b4_ref)                      # (bb*16, 16)

    # ---- conv5 (k=10, s=1, L_out=1): taps -> 10 matmuls with M = bb ---------
    acc = mm(h4_ref[pl.ds(0, bb, stride=_L4P), :], w5_ref[0])
    for tap in range(1, _K5):
        acc = acc + mm(h4_ref[pl.ds(tap, bb, stride=_L4P), :], w5_ref[tap])
    h5 = relu_bias(acc, b5_ref)                               # (bb, 32)

    # ---- fc2 -----------------------------------------------------------------
    o_ref[...] = (mm(h5, wf_ref[...]) + bf_ref[...]).astype(o_ref.dtype)


# ----------------------------------------------------------------------------
# Parameter construction (deterministic, PyTorch-default-like init)
# ----------------------------------------------------------------------------
def _init_conv(key, c_out, c_in, k):
    fan_in = c_in * k
    bound = 1.0 / np.sqrt(fan_in)
    kw, kb = jax.random.split(key)
    w = jax.random.uniform(kw, (c_out, c_in, k), jnp.float32, -bound, bound)
    b = jax.random.uniform(kb, (c_out,), jnp.float32, -bound, bound)
    return w, b


def _init_linear(key, c_out, c_in):
    bound = 1.0 / np.sqrt(c_in)
    kw, kb = jax.random.split(key)
    w = jax.random.uniform(kw, (c_out, c_in), jnp.float32, -bound, bound)
    b = jax.random.uniform(kb, (c_out,), jnp.float32, -bound, bound)
    return w, b


def make_params(in_channels, key):
    keys = jax.random.split(key, 6)
    return {
        "conv1": _init_conv(keys[0], _C1, in_channels, _K1),
        "conv2": _init_conv(keys[1], _C2, _C1, _K2),
        "conv3": _init_conv(keys[2], _C3, _C2, _K3),
        "conv4": _init_conv(keys[3], _C4, _C3, _K4),
        "conv5": _init_conv(keys[4], _C5, _C4, _K5),
        "fc2": _init_linear(keys[5], _CF, _C5),
    }


# ----------------------------------------------------------------------------
# Constant preparation: kernel-layout weights (bf16) and biases (f32 rows)
# ----------------------------------------------------------------------------
def _conv_w_taps(w_oik, c_pad=None):
    # (C_out, C_in, K) -> (K, C_in, C_out): per-tap (C_in, C_out) matrices.
    w = jnp.transpose(w_oik, (2, 1, 0))
    if c_pad is not None and c_pad != w.shape[1]:
        w = jnp.pad(w, ((0, 0), (0, c_pad - w.shape[1]), (0, 0)))
    return w.astype(jnp.bfloat16)


def _bias_row(b):
    return b.reshape(1, -1).astype(jnp.float32)


def prepare_kernel_consts(params, c_pad):
    w1, b1 = params["conv1"]
    w2, b2 = params["conv2"]
    w3, b3 = params["conv3"]
    w4, b4 = params["conv4"]
    w5, b5 = params["conv5"]
    wf, bf = params["fc2"]
    return (
        _conv_w_taps(w1, c_pad), _bias_row(b1),
        _conv_w_taps(w2), _bias_row(b2),
        _conv_w_taps(w3), _bias_row(b3),
        _conv_w_taps(w4), _bias_row(b4),
        _conv_w_taps(w5), _bias_row(b5),
        jnp.transpose(wf).astype(jnp.bfloat16), _bias_row(bf),
    )


# ----------------------------------------------------------------------------
# Full forward pass (single pallas_call)
# ----------------------------------------------------------------------------
def _default_batch_block(batch):
    # Small batches run in one grid step; otherwise 128 samples/step keeps
    # per-step VMEM (~16 KB of activations+scratch per sample, double-buffered
    # bf16 input) small and gives >= 8 pipelined, megacore-shardable steps
    # once the batch reaches 1024.
    return batch if batch <= 128 else 128


def rwhar_forward(params, x_ncl, *, batch_block=None):
    """x_ncl: (B, C_in, L) in the PyTorch layout; returns (B, 8)."""
    B, C_in, L = x_ncl.shape
    if L != _L_IN:
        raise ValueError(
            f"input length {L} unsupported: flattening conv5's output into "
            f"Linear(32, 8) requires conv5 output length 1, i.e. L == {_L_IN}")

    c_pad = ((max(C_in, 1) + 7) // 8) * 8
    bb = _default_batch_block(B) if batch_block is None else int(batch_block)
    if bb <= 0:
        raise ValueError("batch_block must be positive")
    b_pad = ((B + bb - 1) // bb) * bb

    # NCL -> NLC, channel pad to a sublane-aligned contraction dim, bf16 to
    # halve the kernel's HBM input traffic (accumulation stays f32 in-kernel).
    # TODO(synk): have the producer emit (B, L, C) bf16 directly so this extra
    # XLA pass over x disappears.
    x = jnp.transpose(x_ncl, (0, 2, 1))
    x = jnp.pad(x, ((0, b_pad - B), (0, 0), (0, c_pad - C_in)))
    x = x.astype(jnp.bfloat16)

    consts = prepare_kernel_consts(params, c_pad)
    grid = (b_pad // bb,)

    def const_spec(a):
        nd = a.ndim
        return pl.BlockSpec(a.shape, lambda i, _nd=nd: (0,) * _nd)

    # All intermediate activations stay VMEM-resident (f32 scratch).
    scratch = [
        pltpu.VMEM((bb * _L1, _C1), jnp.float32),             # h1
        pltpu.VMEM((bb * _L2 + _H2_PAD, _C2), jnp.float32),   # h2 (+ zero tail)
        pltpu.VMEM((bb, 3 * _L4P, _C3), jnp.float32),         # h3 (48 rows/sample)
        pltpu.VMEM((bb * _L4P, _C4), jnp.float32),            # h4 (16 rows/sample)
    ]

    # ~16 KB/sample of scratch + activations, double-buffered bf16 input of
    # ~1.6 KB/sample: 32 MiB covers bb <= 256 with large headroom and fits
    # every generation (v5e/v6e 128 MiB physical, v7x 64 MiB).
    vmem_limit = int(min(96 * 2**20, max(32 * 2**20, 64 * 1024 * bb)))

    out = pl.pallas_call(
        _rwhar_fused_kernel,
        out_shape=jax.ShapeDtypeStruct((b_pad, _CF), jnp.float32),
        grid=grid,
        in_specs=[pl.BlockSpec((bb, _L_IN, c_pad), lambda i: (i, 0, 0))]
                + [const_spec(a) for a in consts],
        out_specs=pl.BlockSpec((bb, _CF), lambda i: (i, 0)),
        scratch_shapes=scratch,
        compiler_params=pltpu.CompilerParams(
            dimension_semantics=("parallel",),
            vmem_limit_bytes=vmem_limit),
    )(x, *consts)
    return out[:B]


# ----------------------------------------------------------------------------
# Pure-JAX reference (lax.conv) for a correctness sanity check
# ----------------------------------------------------------------------------
def rwhar_forward_ref(params, x_ncl):
    def conv(x, w, b, stride):
        y = jax.lax.conv_general_dilated(
            x, w, window_strides=(stride,), padding="VALID",
            dimension_numbers=("NCH", "OIH", "NCH"))
        return jax.nn.relu(y + b[None, :, None])

    x = x_ncl
    for name, stride in [("conv1", 1), ("conv2", 3), ("conv3", 1),
                         ("conv4", 3), ("conv5", 1)]:
        w, b = params[name]
        x = conv(x, w, b, stride)
    x = x.reshape(x.shape[0], -1)
    w_fc, b_fc = params["fc2"]
    return x @ jnp.transpose(w_fc) + b_fc[None, :]


if __name__ == "__main__":
    B, C_IN, L = 2, 3, 100  # L=100 is required so conv5's output length is 1

    root = jax.random.PRNGKey(0)
    k_x, k_p = jax.random.split(root)
    x = jax.random.normal(k_x, (B, C_IN, L), jnp.float32)
    params = make_params(C_IN, k_p)

    fwd = jax.jit(rwhar_forward)
    out = jax.block_until_ready(fwd(params, x))
    ref = jax.block_until_ready(rwhar_forward_ref(params, x))

    assert out.shape == (B, 8), out.shape
    np.testing.assert_allclose(np.asarray(out), np.asarray(ref),
                               rtol=5e-2, atol=5e-2)
    print("KERNEL_OK")
</pallas_src>

<mosaic_0001>
module attributes {stable_mosaic.version = 11 : i64} {
  func.func @_rwhar_fused_kernel(%arg0: i32, %arg1: memref<2x100x8xbf16, #tpu.memory_space<vmem>>, %arg2: memref<5x8x16xbf16, #tpu.memory_space<vmem>>, %arg3: memref<1x16xf32, #tpu.memory_space<vmem>>, %arg4: memref<3x16x16xbf16, #tpu.memory_space<vmem>>, %arg5: memref<1x16xf32, #tpu.memory_space<vmem>>, %arg6: memref<3x16x16xbf16, #tpu.memory_space<vmem>>, %arg7: memref<1x16xf32, #tpu.memory_space<vmem>>, %arg8: memref<3x16x16xbf16, #tpu.memory_space<vmem>>, %arg9: memref<1x16xf32, #tpu.memory_space<vmem>>, %arg10: memref<10x16x32xbf16, #tpu.memory_space<vmem>>, %arg11: memref<1x32xf32, #tpu.memory_space<vmem>>, %arg12: memref<32x8xbf16, #tpu.memory_space<vmem>>, %arg13: memref<1x8xf32, #tpu.memory_space<vmem>>, %arg14: memref<2x8xf32, #tpu.memory_space<vmem>>, %arg15: memref<192x16xf32, #tpu.memory_space<vmem>>, %arg16: memref<72x16xf32, #tpu.memory_space<vmem>>, %arg17: memref<2x48x16xf32, #tpu.memory_space<vmem>>, %arg18: memref<32x16xf32, #tpu.memory_space<vmem>>) attributes {dimension_semantics = [#tpu.dimension_semantics<parallel>], iteration_bounds = array<i64: 1>, scalar_prefetch = 0 : i64, scratch_operands = 4 : i64, tpu.core_type = #tpu.core_type<tc>, window_params = [{transform_indices = @transform_0, window_bounds = array<i64: 2, 100, 8>}, {pipeline_mode = #tpu.pipeline_mode<synchronous>, transform_indices = @transform_1, window_bounds = array<i64: 5, 8, 16>}, {pipeline_mode = #tpu.pipeline_mode<synchronous>, transform_indices = @transform_2, window_bounds = array<i64: 1, 16>}, {pipeline_mode = #tpu.pipeline_mode<synchronous>, transform_indices = @transform_3, window_bounds = array<i64: 3, 16, 16>}, {pipeline_mode = #tpu.pipeline_mode<synchronous>, transform_indices = @transform_4, window_bounds = array<i64: 1, 16>}, {pipeline_mode = #tpu.pipeline_mode<synchronous>, transform_indices = @transform_5, window_bounds = array<i64: 3, 16, 16>}, {pipeline_mode = #tpu.pipeline_mode<synchronous>, transform_indices = @transform_6, window_bounds = array<i64: 1, 16>}, {pipeline_mode = #tpu.pipeline_mode<synchronous>, transform_indices = @transform_7, window_bounds = array<i64: 3, 16, 16>}, {pipeline_mode = #tpu.pipeline_mode<synchronous>, transform_indices = @transform_8, window_bounds = array<i64: 1, 16>}, {pipeline_mode = #tpu.pipeline_mode<synchronous>, transform_indices = @transform_9, window_bounds = array<i64: 10, 16, 32>}, {pipeline_mode = #tpu.pipeline_mode<synchronous>, transform_indices = @transform_10, window_bounds = array<i64: 1, 32>}, {pipeline_mode = #tpu.pipeline_mode<synchronous>, transform_indices = @transform_11, window_bounds = array<i64: 32, 8>}, {pipeline_mode = #tpu.pipeline_mode<synchronous>, transform_indices = @transform_12, window_bounds = array<i64: 1, 8>}, {transform_indices = @transform_13, window_bounds = array<i64: 2, 8>}]} {
    %c0 = arith.constant 0 : index
    %c0_0 = arith.constant 0 : index
    %c0_1 = arith.constant 0 : index
    %0 = vector.load %arg1[%c0, %c0_0, %c0_1] : memref<2x100x8xbf16, #tpu.memory_space<vmem>>, vector<2x96x8xbf16>
    %1 = vector.shape_cast %0 : vector<2x96x8xbf16> to vector<192x8xbf16>
    %c0_2 = arith.constant 0 : index
    %c0_3 = arith.constant 0 : index
    %c0_4 = arith.constant 0 : index
    %2 = vector.load %arg2[%c0_2, %c0_3, %c0_4] : memref<5x8x16xbf16, #tpu.memory_space<vmem>>, vector<1x8x16xbf16>
    %3 = vector.shape_cast %2 : vector<1x8x16xbf16> to vector<8x16xbf16>
    %cst = arith.constant dense<0.000000e+00> : vector<192x16xf32>
    %4 = tpu.matmul %1, %3, %cst {dimension_numbers = #tpu.dot_dimension_numbers<[1], [0], [0], [1], [0, 0, 1, 1], [], []>} : vector<192x8xbf16>, vector<8x16xbf16>, vector<192x16xf32> -> vector<192x16xf32>
    %c0_5 = arith.constant 0 : index
    %c1 = arith.constant 1 : index
    %c0_6 = arith.constant 0 : index
    %5 = vector.load %arg1[%c0_5, %c1, %c0_6] : memref<2x100x8xbf16, #tpu.memory_space<vmem>>, vector<2x96x8xbf16>
    %6 = vector.shape_cast %5 : vector<2x96x8xbf16> to vector<192x8xbf16>
    %c1_7 = arith.constant 1 : index
    %c0_8 = arith.constant 0 : index
    %c0_9 = arith.constant 0 : index
    %7 = vector.load %arg2[%c1_7, %c0_8, %c0_9] : memref<5x8x16xbf16, #tpu.memory_space<vmem>>, vector<1x8x16xbf16>
    %8 = vector.shape_cast %7 : vector<1x8x16xbf16> to vector<8x16xbf16>
    %cst_10 = arith.constant dense<0.000000e+00> : vector<192x16xf32>
    %9 = tpu.matmul %6, %8, %cst_10 {dimension_numbers = #tpu.dot_dimension_numbers<[1], [0], [0], [1], [0, 0, 1, 1], [], []>} : vector<192x8xbf16>, vector<8x16xbf16>, vector<192x16xf32> -> vector<192x16xf32>
    %10 = arith.addf %4, %9 : vector<192x16xf32>
    %c0_11 = arith.constant 0 : index
    %c2 = arith.constant 2 : index
    %c0_12 = arith.constant 0 : index
    %11 = vector.load %arg1[%c0_11, %c2, %c0_12] : memref<2x100x8xbf16, #tpu.memory_space<vmem>>, vector<2x96x8xbf16>
    %12 = vector.shape_cast %11 : vector<2x96x8xbf16> to vector<192x8xbf16>
    %c2_13 = arith.constant 2 : index
    %c0_14 = arith.constant 0 : index
    %c0_15 = arith.constant 0 : index
    %13 = vector.load %arg2[%c2_13, %c0_14, %c0_15] : memref<5x8x16xbf16, #tpu.memory_space<vmem>>, vector<1x8x16xbf16>
    %14 = vector.shape_cast %13 : vector<1x8x16xbf16> to vector<8x16xbf16>
    %cst_16 = arith.constant dense<0.000000e+00> : vector<192x16xf32>
    %15 = tpu.matmul %12, %14, %cst_16 {dimension_numbers = #tpu.dot_dimension_numbers<[1], [0], [0], [1], [0, 0, 1, 1], [], []>} : vector<192x8xbf16>, vector<8x16xbf16>, vector<192x16xf32> -> vector<192x16xf32>
    %16 = arith.addf %10, %15 : vector<192x16xf32>
    %c0_17 = arith.constant 0 : index
    %c3 = arith.constant 3 : index
    %c0_18 = arith.constant 0 : index
    %17 = vector.load %arg1[%c0_17, %c3, %c0_18] : memref<2x100x8xbf16, #tpu.memory_space<vmem>>, vector<2x96x8xbf16>
    %18 = vector.shape_cast %17 : vector<2x96x8xbf16> to vector<192x8xbf16>
    %c3_19 = arith.constant 3 : index
    %c0_20 = arith.constant 0 : index
    %c0_21 = arith.constant 0 : index
    %19 = vector.load %arg2[%c3_19, %c0_20, %c0_21] : memref<5x8x16xbf16, #tpu.memory_space<vmem>>, vector<1x8x16xbf16>
    %20 = vector.shape_cast %19 : vector<1x8x16xbf16> to vector<8x16xbf16>
    %cst_22 = arith.constant dense<0.000000e+00> : vector<192x16xf32>
    %21 = tpu.matmul %18, %20, %cst_22 {dimension_numbers = #tpu.dot_dimension_numbers<[1], [0], [0], [1], [0, 0, 1, 1], [], []>} : vector<192x8xbf16>, vector<8x16xbf16>, vector<192x16xf32> -> vector<192x16xf32>
    %22 = arith.addf %16, %21 : vector<192x16xf32>
    %c0_23 = arith.constant 0 : index
    %c4 = arith.constant 4 : index
    %c0_24 = arith.constant 0 : index
    %23 = vector.load %arg1[%c0_23, %c4, %c0_24] : memref<2x100x8xbf16, #tpu.memory_space<vmem>>, vector<2x96x8xbf16>
    %24 = vector.shape_cast %23 : vector<2x96x8xbf16> to vector<192x8xbf16>
    %c4_25 = arith.constant 4 : index
    %c0_26 = arith.constant 0 : index
    %c0_27 = arith.constant 0 : index
    %25 = vector.load %arg2[%c4_25, %c0_26, %c0_27] : memref<5x8x16xbf16, #tpu.memory_space<vmem>>, vector<1x8x16xbf16>
    %26 = vector.shape_cast %25 : vector<1x8x16xbf16> to vector<8x16xbf16>
    %cst_28 = arith.constant dense<0.000000e+00> : vector<192x16xf32>
    %27 = tpu.matmul %24, %26, %cst_28 {dimension_numbers = #tpu.dot_dimension_numbers<[1], [0], [0], [1], [0, 0, 1, 1], [], []>} : vector<192x8xbf16>, vector<8x16xbf16>, vector<192x16xf32> -> vector<192x16xf32>
    %28 = arith.addf %22, %27 : vector<192x16xf32>
    %c0_29 = arith.constant 0 : index
    %c0_30 = arith.constant 0 : index
    %29 = vector.load %arg3[%c0_29, %c0_30] : memref<1x16xf32, #tpu.memory_space<vmem>>, vector<1x16xf32>
    %30 = vector.broadcast %29 : vector<1x16xf32> to vector<192x16xf32>
    %31 = arith.addf %28, %30 : vector<192x16xf32>
    %cst_31 = arith.constant 0.000000e+00 : f32
    %32 = vector.broadcast %cst_31 : f32 to vector<192x16xf32>
    %33 = arith.maximumf %31, %32 : vector<192x16xf32>
    %c0_32 = arith.constant 0 : index
    %c0_33 = arith.constant 0 : index
    %34 = vector.load %arg15[%c0_32, %c0_33] : memref<192x16xf32, #tpu.memory_space<vmem>>, vector<192x16xf32>
    tpu.vector_store %arg15[%c0_32, %c0_33], %33 {strides = array<i32>} : memref<192x16xf32, #tpu.memory_space<vmem>>, vector<192x16xf32>,
    %c0_34 = arith.constant 0 : index
    %c0_35 = arith.constant 0 : index
    %35 = tpu.strided_load %arg15[%c0_34, %c0_35] {strides = array<i32: 3, 1>} : memref<192x16xf32, #tpu.memory_space<vmem>>, vector<64x16xf32>
    %c0_36 = arith.constant 0 : index
    %c0_37 = arith.constant 0 : index
    %c0_38 = arith.constant 0 : index
    %36 = vector.load %arg4[%c0_36, %c0_37, %c0_38] : memref<3x16x16xbf16, #tpu.memory_space<vmem>>, vector<1x16x16xbf16>
    %37 = vector.shape_cast %36 : vector<1x16x16xbf16> to vector<16x16xbf16>
    %38 = arith.truncf %35 : vector<64x16xf32> to vector<64x16xbf16>
    %cst_39 = arith.constant dense<0.000000e+00> : vector<64x16xf32>
    %39 = tpu.matmul %38, %37, %cst_39 {dimension_numbers = #tpu.dot_dimension_numbers<[1], [0], [0], [1], [0, 0, 1, 1], [], []>} : vector<64x16xbf16>, vector<16x16xbf16>, vector<64x16xf32> -> vector<64x16xf32>
    %c1_40 = arith.constant 1 : index
    %c0_41 = arith.constant 0 : index
    %40 = tpu.strided_load %arg15[%c1_40, %c0_41] {strides = array<i32: 3, 1>} : memref<192x16xf32, #tpu.memory_space<vmem>>, vector<64x16xf32>
    %c1_42 = arith.constant 1 : index
    %c0_43 = arith.constant 0 : index
    %c0_44 = arith.constant 0 : index
    %41 = vector.load %arg4[%c1_42, %c0_43, %c0_44] : memref<3x16x16xbf16, #tpu.memory_space<vmem>>, vector<1x16x16xbf16>
    %42 = vector.shape_cast %41 : vector<1x16x16xbf16> to vector<16x16xbf16>
    %43 = arith.truncf %40 : vector<64x16xf32> to vector<64x16xbf16>
    %cst_45 = arith.constant dense<0.000000e+00> : vector<64x16xf32>
    %44 = tpu.matmul %43, %42, %cst_45 {dimension_numbers = #tpu.dot_dimension_numbers<[1], [0], [0], [1], [0, 0, 1, 1], [], []>} : vector<64x16xbf16>, vector<16x16xbf16>, vector<64x16xf32> -> vector<64x16xf32>
    %45 = arith.addf %39, %44 : vector<64x16xf32>
    %c2_46 = arith.constant 2 : index
    %c0_47 = arith.constant 0 : index
    %46 = tpu.strided_load %arg15[%c2_46, %c0_47] {strides = array<i32: 3, 1>} : memref<192x16xf32, #tpu.memory_space<vmem>>, vector<64x16xf32>
    %c2_48 = arith.constant 2 : index
    %c0_49 = arith.constant 0 : index
    %c0_50 = arith.constant 0 : index
    %47 = vector.load %arg4[%c2_48, %c0_49, %c0_50] : memref<3x16x16xbf16, #tpu.memory_space<vmem>>, vector<1x16x16xbf16>
    %48 = vector.shape_cast %47 : vector<1x16x16xbf16> to vector<16x16xbf16>
    %49 = arith.truncf %46 : vector<64x16xf32> to vector<64x16xbf16>
    %cst_51 = arith.constant dense<0.000000e+00> : vector<64x16xf32>
    %50 = tpu.matmul %49, %48, %cst_51 {dimension_numbers = #tpu.dot_dimension_numbers<[1], [0], [0], [1], [0, 0, 1, 1], [], []>} : vector<64x16xbf16>, vector<16x16xbf16>, vector<64x16xf32> -> vector<64x16xf32>
    %51 = arith.addf %45, %50 : vector<64x16xf32>
    %c0_52 = arith.constant 0 : index
    %c0_53 = arith.constant 0 : index
    %52 = vector.load %arg5[%c0_52, %c0_53] : memref<1x16xf32, #tpu.memory_space<vmem>>, vector<1x16xf32>
    %53 = vector.broadcast %52 : vector<1x16xf32> to vector<64x16xf32>
    %54 = arith.addf %51, %53 : vector<64x16xf32>
    %cst_54 = arith.constant 0.000000e+00 : f32
    %55 = vector.broadcast %cst_54 : f32 to vector<64x16xf32>
    %56 = arith.maximumf %54, %55 : vector<64x16xf32>
    %c0_55 = arith.constant 0 : index
    %c0_56 = arith.constant 0 : index
    %57 = vector.load %arg16[%c0_55, %c0_56] : memref<72x16xf32, #tpu.memory_space<vmem>>, vector<64x16xf32>
    tpu.vector_store %arg16[%c0_55, %c0_56], %56 {strides = array<i32>} : memref<72x16xf32, #tpu.memory_space<vmem>>, vector<64x16xf32>,
    %cst_57 = arith.constant 0.000000e+00 : f32
    %58 = vector.broadcast %cst_57 : f32 to vector<8x16xf32>
    %c64 = arith.constant 64 : index
    %c0_58 = arith.constant 0 : index
    %59 = vector.load %arg16[%c64, %c0_58] : memref<72x16xf32, #tpu.memory_space<vmem>>, vector<8x16xf32>
    tpu.vector_store %arg16[%c64, %c0_58], %58 {strides = array<i32>} : memref<72x16xf32, #tpu.memory_space<vmem>>, vector<8x16xf32>,
    %c0_59 = arith.constant 0 : index
    %c0_60 = arith.constant 0 : index
    %60 = vector.load %arg16[%c0_59, %c0_60] : memref<72x16xf32, #tpu.memory_space<vmem>>, vector<64x16xf32>
    %c0_61 = arith.constant 0 : index
    %c0_62 = arith.constant 0 : index
    %c0_63 = arith.constant 0 : index
    %61 = vector.load %arg6[%c0_61, %c0_62, %c0_63] : memref<3x16x16xbf16, #tpu.memory_space<vmem>>, vector<1x16x16xbf16>
    %62 = vector.shape_cast %61 : vector<1x16x16xbf16> to vector<16x16xbf16>
    %63 = arith.truncf %60 : vector<64x16xf32> to vector<64x16xbf16>
    %cst_64 = arith.constant dense<0.000000e+00> : vector<64x16xf32>
    %64 = tpu.matmul %63, %62, %cst_64 {dimension_numbers = #tpu.dot_dimension_numbers<[1], [0], [0], [1], [0, 0, 1, 1], [], []>} : vector<64x16xbf16>, vector<16x16xbf16>, vector<64x16xf32> -> vector<64x16xf32>
    %c1_65 = arith.constant 1 : index
    %c0_66 = arith.constant 0 : index
    %65 = vector.load %arg16[%c1_65, %c0_66] : memref<72x16xf32, #tpu.memory_space<vmem>>, vector<64x16xf32>
    %c1_67 = arith.constant 1 : index
    %c0_68 = arith.constant 0 : index
    %c0_69 = arith.constant 0 : index
    %66 = vector.load %arg6[%c1_67, %c0_68, %c0_69] : memref<3x16x16xbf16, #tpu.memory_space<vmem>>, vector<1x16x16xbf16>
    %67 = vector.shape_cast %66 : vector<1x16x16xbf16> to vector<16x16xbf16>
    %68 = arith.truncf %65 : vector<64x16xf32> to vector<64x16xbf16>
    %cst_70 = arith.constant dense<0.000000e+00> : vector<64x16xf32>
    %69 = tpu.matmul %68, %67, %cst_70 {dimension_numbers = #tpu.dot_dimension_numbers<[1], [0], [0], [1], [0, 0, 1, 1], [], []>} : vector<64x16xbf16>, vector<16x16xbf16>, vector<64x16xf32> -> vector<64x16xf32>
    %70 = arith.addf %64, %69 : vector<64x16xf32>
    %c2_71 = arith.constant 2 : index
    %c0_72 = arith.constant 0 : index
    %71 = vector.load %arg16[%c2_71, %c0_72] : memref<72x16xf32, #tpu.memory_space<vmem>>, vector<64x16xf32>
    %c2_73 = arith.constant 2 : index
    %c0_74 = arith.constant 0 : index
    %c0_75 = arith.constant 0 : index
    %72 = vector.load %arg6[%c2_73, %c0_74, %c0_75] : memref<3x16x16xbf16, #tpu.memory_space<vmem>>, vector<1x16x16xbf16>
    %73 = vector.shape_cast %72 : vector<1x16x16xbf16> to vector<16x16xbf16>
    %74 = arith.truncf %71 : vector<64x16xf32> to vector<64x16xbf16>
    %cst_76 = arith.constant dense<0.000000e+00> : vector<64x16xf32>
    %75 = tpu.matmul %74, %73, %cst_76 {dimension_numbers = #tpu.dot_dimension_numbers<[1], [0], [0], [1], [0, 0, 1, 1], [], []>} : vector<64x16xbf16>, vector<16x16xbf16>, vector<64x16xf32> -> vector<64x16xf32>
    %76 = arith.addf %70, %75 : vector<64x16xf32>
    %c0_77 = arith.constant 0 : index
    %c0_78 = arith.constant 0 : index
    %77 = vector.load %arg7[%c0_77, %c0_78] : memref<1x16xf32, #tpu.memory_space<vmem>>, vector<1x16xf32>
    %78 = vector.broadcast %77 : vector<1x16xf32> to vector<64x16xf32>
    %79 = arith.addf %76, %78 : vector<64x16xf32>
    %cst_79 = arith.constant 0.000000e+00 : f32
    %80 = vector.broadcast %cst_79 : f32 to vector<64x16xf32>
    %81 = arith.maximumf %79, %80 : vector<64x16xf32>
    %82 = vector.shape_cast %81 : vector<64x16xf32> to vector<2x32x16xf32>
    %c0_80 = arith.constant 0 : index
    %c0_81 = arith.constant 0 : index
    %c0_82 = arith.constant 0 : index
    %83 = vector.load %arg17[%c0_80, %c0_81, %c0_82] : memref<2x48x16xf32, #tpu.memory_space<vmem>>, vector<2x32x16xf32>
    tpu.vector_store %arg17[%c0_80, %c0_81, %c0_82], %82 {strides = array<i32>} : memref<2x48x16xf32, #tpu.memory_space<vmem>>, vector<2x32x16xf32>,
    %cst_83 = arith.constant 0.000000e+00 : f32
    %84 = vector.broadcast %cst_83 : f32 to vector<2x16x16xf32>
    %c0_84 = arith.constant 0 : index
    %c32 = arith.constant 32 : index
    %c0_85 = arith.constant 0 : index
    %85 = vector.load %arg17[%c0_84, %c32, %c0_85] : memref<2x48x16xf32, #tpu.memory_space<vmem>>, vector<2x16x16xf32>
    tpu.vector_store %arg17[%c0_84, %c32, %c0_85], %84 {strides = array<i32>} : memref<2x48x16xf32, #tpu.memory_space<vmem>>, vector<2x16x16xf32>,
    %c0_86 = arith.constant 0 : index
    %c0_87 = arith.constant 0 : index
    %c0_88 = arith.constant 0 : index
    %86 = tpu.strided_load %arg17[%c0_86, %c0_87, %c0_88] {strides = array<i32: 1, 3, 1>} : memref<2x48x16xf32, #tpu.memory_space<vmem>>, vector<2x16x16xf32>
    %87 = vector.shape_cast %86 : vector<2x16x16xf32> to vector<32x16xf32>
    %c0_89 = arith.constant 0 : index
    %c0_90 = arith.constant 0 : index
    %c0_91 = arith.constant 0 : index
    %88 = vector.load %arg8[%c0_89, %c0_90, %c0_91] : memref<3x16x16xbf16, #tpu.memory_space<vmem>>, vector<1x16x16xbf16>
    %89 = vector.shape_cast %88 : vector<1x16x16xbf16> to vector<16x16xbf16>
    %90 = arith.truncf %87 : vector<32x16xf32> to vector<32x16xbf16>
    %cst_92 = arith.constant dense<0.000000e+00> : vector<32x16xf32>
    %91 = tpu.matmul %90, %89, %cst_92 {dimension_numbers = #tpu.dot_dimension_numbers<[1], [0], [0], [1], [0, 0, 1, 1], [], []>} : vector<32x16xbf16>, vector<16x16xbf16>, vector<32x16xf32> -> vector<32x16xf32>
    %c0_93 = arith.constant 0 : index
    %c1_94 = arith.constant 1 : index
    %c0_95 = arith.constant 0 : index
    %92 = tpu.strided_load %arg17[%c0_93, %c1_94, %c0_95] {strides = array<i32: 1, 3, 1>} : memref<2x48x16xf32, #tpu.memory_space<vmem>>, vector<2x16x16xf32>
    %93 = vector.shape_cast %92 : vector<2x16x16xf32> to vector<32x16xf32>
    %c1_96 = arith.constant 1 : index
    %c0_97 = arith.constant 0 : index
    %c0_98 = arith.constant 0 : index
    %94 = vector.load %arg8[%c1_96, %c0_97, %c0_98] : memref<3x16x16xbf16, #tpu.memory_space<vmem>>, vector<1x16x16xbf16>
    %95 = vector.shape_cast %94 : vector<1x16x16xbf16> to vector<16x16xbf16>
    %96 = arith.truncf %93 : vector<32x16xf32> to vector<32x16xbf16>
    %cst_99 = arith.constant dense<0.000000e+00> : vector<32x16xf32>
    %97 = tpu.matmul %96, %95, %cst_99 {dimension_numbers = #tpu.dot_dimension_numbers<[1], [0], [0], [1], [0, 0, 1, 1], [], []>} : vector<32x16xbf16>, vector<16x16xbf16>, vector<32x16xf32> -> vector<32x16xf32>
    %98 = arith.addf %91, %97 : vector<32x16xf32>
    %c0_100 = arith.constant 0 : index
    %c2_101 = arith.constant 2 : index
    %c0_102 = arith.constant 0 : index
    %99 = tpu.strided_load %arg17[%c0_100, %c2_101, %c0_102] {strides = array<i32: 1, 3, 1>} : memref<2x48x16xf32, #tpu.memory_space<vmem>>, vector<2x16x16xf32>
    %100 = vector.shape_cast %99 : vector<2x16x16xf32> to vector<32x16xf32>
    %c2_103 = arith.constant 2 : index
    %c0_104 = arith.constant 0 : index
    %c0_105 = arith.constant 0 : index
    %101 = vector.load %arg8[%c2_103, %c0_104, %c0_105] : memref<3x16x16xbf16, #tpu.memory_space<vmem>>, vector<1x16x16xbf16>
    %102 = vector.shape_cast %101 : vector<1x16x16xbf16> to vector<16x16xbf16>
    %103 = arith.truncf %100 : vector<32x16xf32> to vector<32x16xbf16>
    %cst_106 = arith.constant dense<0.000000e+00> : vector<32x16xf32>
    %104 = tpu.matmul %103, %102, %cst_106 {dimension_numbers = #tpu.dot_dimension_numbers<[1], [0], [0], [1], [0, 0, 1, 1], [], []>} : vector<32x16xbf16>, vector<16x16xbf16>, vector<32x16xf32> -> vector<32x16xf32>
    %105 = arith.addf %98, %104 : vector<32x16xf32>
    %c0_107 = arith.constant 0 : index
    %c0_108 = arith.constant 0 : index
    %106 = vector.load %arg9[%c0_107, %c0_108] : memref<1x16xf32, #tpu.memory_space<vmem>>, vector<1x16xf32>
    %107 = vector.broadcast %106 : vector<1x16xf32> to vector<32x16xf32>
    %108 = arith.addf %105, %107 : vector<32x16xf32>
    %cst_109 = arith.constant 0.000000e+00 : f32
    %109 = vector.broadcast %cst_109 : f32 to vector<32x16xf32>
    %110 = arith.maximumf %108, %109 : vector<32x16xf32>
    %c0_110 = arith.constant 0 : index
    %c0_111 = arith.constant 0 : index
    %111 = vector.load %arg18[%c0_110, %c0_111] : memref<32x16xf32, #tpu.memory_space<vmem>>, vector<32x16xf32>
    tpu.vector_store %arg18[%c0_110, %c0_111], %110 {strides = array<i32>} : memref<32x16xf32, #tpu.memory_space<vmem>>, vector<32x16xf32>,
    %c0_112 = arith.constant 0 : index
    %c0_113 = arith.constant 0 : index
    %112 = tpu.strided_load %arg18[%c0_112, %c0_113] {strides = array<i32: 16, 1>} : memref<32x16xf32, #tpu.memory_space<vmem>>, vector<2x16xf32>
    %c0_114 = arith.constant 0 : index
    %c0_115 = arith.constant 0 : index
    %c0_116 = arith.constant 0 : index
    %113 = vector.load %arg10[%c0_114, %c0_115, %c0_116] : memref<10x16x32xbf16, #tpu.memory_space<vmem>>, vector<1x16x32xbf16>
    %114 = vector.shape_cast %113 : vector<1x16x32xbf16> to vector<16x32xbf16>
    %115 = arith.truncf %112 : vector<2x16xf32> to vector<2x16xbf16>
    %cst_117 = arith.constant dense<0.000000e+00> : vector<2x32xf32>
    %116 = tpu.matmul %115, %114, %cst_117 {dimension_numbers = #tpu.dot_dimension_numbers<[1], [0], [0], [1], [0, 0, 1, 1], [], []>} : vector<2x16xbf16>, vector<16x32xbf16>, vector<2x32xf32> -> vector<2x32xf32>
    %c1_118 = arith.constant 1 : index
    %c0_119 = arith.constant 0 : index
    %117 = tpu.strided_load %arg18[%c1_118, %c0_119] {strides = array<i32: 16, 1>} : memref<32x16xf32, #tpu.memory_space<vmem>>, vector<2x16xf32>
    %c1_120 = arith.constant 1 : index
    %c0_121 = arith.constant 0 : index
    %c0_122 = arith.constant 0 : index
    %118 = vector.load %arg10[%c1_120, %c0_121, %c0_122] : memref<10x16x32xbf16, #tpu.memory_space<vmem>>, vector<1x16x32xbf16>
    %119 = vector.shape_cast %118 : vector<1x16x32xbf16> to vector<16x32xbf16>
    %120 = arith.truncf %117 : vector<2x16xf32> to vector<2x16xbf16>
    %cst_123 = arith.constant dense<0.000000e+00> : vector<2x32xf32>
    %121 = tpu.matmul %120, %119, %cst_123 {dimension_numbers = #tpu.dot_dimension_numbers<[1], [0], [0], [1], [0, 0, 1, 1], [], []>} : vector<2x16xbf16>, vector<16x32xbf16>, vector<2x32xf32> -> vector<2x32xf32>
    %122 = arith.addf %116, %121 : vector<2x32xf32>
    %c2_124 = arith.constant 2 : index
    %c0_125 = arith.constant 0 : index
    %123 = tpu.strided_load %arg18[%c2_124, %c0_125] {strides = array<i32: 16, 1>} : memref<32x16xf32, #tpu.memory_space<vmem>>, vector<2x16xf32>
    %c2_126 = arith.constant 2 : index
    %c0_127 = arith.constant 0 : index
    %c0_128 = arith.constant 0 : index
    %124 = vector.load %arg10[%c2_126, %c0_127, %c0_128] : memref<10x16x32xbf16, #tpu.memory_space<vmem>>, vector<1x16x32xbf16>
    %125 = vector.shape_cast %124 : vector<1x16x32xbf16> to vector<16x32xbf16>
    %126 = arith.truncf %123 : vector<2x16xf32> to vector<2x16xbf16>
    %cst_129 = arith.constant dense<0.000000e+00> : vector<2x32xf32>
    %127 = tpu.matmul %126, %125, %cst_129 {dimension_numbers = #tpu.dot_dimension_numbers<[1], [0], [0], [1], [0, 0, 1, 1], [], []>} : vector<2x16xbf16>, vector<16x32xbf16>, vector<2x32xf32> -> vector<2x32xf32>
    %128 = arith.addf %122, %127 : vector<2x32xf32>
    %c3_130 = arith.constant 3 : index
    %c0_131 = arith.constant 0 : index
    %129 = tpu.strided_load %arg18[%c3_130, %c0_131] {strides = array<i32: 16, 1>} : memref<32x16xf32, #tpu.memory_space<vmem>>, vector<2x16xf32>
    %c3_132 = arith.constant 3 : index
    %c0_133 = arith.constant 0 : index
    %c0_134 = arith.constant 0 : index
    %130 = vector.load %arg10[%c3_132, %c0_133, %c0_134] : memref<10x16x32xbf16, #tpu.memory_space<vmem>>, vector<1x16x32xbf16>
    %131 = vector.shape_cast %130 : vector<1x16x32xbf16> to vector<16x32xbf16>
    %132 = arith.truncf %129 : vector<2x16xf32> to vector<2x16xbf16>
    %cst_135 = arith.constant dense<0.000000e+00> : vector<2x32xf32>
    %133 = tpu.matmul %132, %131, %cst_135 {dimension_numbers = #tpu.dot_dimension_numbers<[1], [0], [0], [1], [0, 0, 1, 1], [], []>} : vector<2x16xbf16>, vector<16x32xbf16>, vector<2x32xf32> -> vector<2x32xf32>
    %134 = arith.addf %128, %133 : vector<2x32xf32>
    %c4_136 = arith.constant 4 : index
    %c0_137 = arith.constant 0 : index
    %135 = tpu.strided_load %arg18[%c4_136, %c0_137] {strides = array<i32: 16, 1>} : memref<32x16xf32, #tpu.memory_space<vmem>>, vector<2x16xf32>
    %c4_138 = arith.constant 4 : index
    %c0_139 = arith.constant 0 : index
    %c0_140 = arith.constant 0 : index
    %136 = vector.load %arg10[%c4_138, %c0_139, %c0_140] : memref<10x16x32xbf16, #tpu.memory_space<vmem>>, vector<1x16x32xbf16>
    %137 = vector.shape_cast %136 : vector<1x16x32xbf16> to vector<16x32xbf16>
    %138 = arith.truncf %135 : vector<2x16xf32> to vector<2x16xbf16>
    %cst_141 = arith.constant dense<0.000000e+00> : vector<2x32xf32>
    %139 = tpu.matmul %138, %137, %cst_141 {dimension_numbers = #tpu.dot_dimension_numbers<[1], [0], [0], [1], [0, 0, 1, 1], [], []>} : vector<2x16xbf16>, vector<16x32xbf16>, vector<2x32xf32> -> vector<2x32xf32>
    %140 = arith.addf %134, %139 : vector<2x32xf32>
    %c5 = arith.constant 5 : index
    %c0_142 = arith.constant 0 : index
    %141 = tpu.strided_load %arg18[%c5, %c0_142] {strides = array<i32: 16, 1>} : memref<32x16xf32, #tpu.memory_space<vmem>>, vector<2x16xf32>
    %c5_143 = arith.constant 5 : index
    %c0_144 = arith.constant 0 : index
    %c0_145 = arith.constant 0 : index
    %142 = vector.load %arg10[%c5_143, %c0_144, %c0_145] : memref<10x16x32xbf16, #tpu.memory_space<vmem>>, vector<1x16x32xbf16>
    %143 = vector.shape_cast %142 : vector<1x16x32xbf16> to vector<16x32xbf16>
    %144 = arith.truncf %141 : vector<2x16xf32> to vector<2x16xbf16>
    %cst_146 = arith.constant dense<0.000000e+00> : vector<2x32xf32>
    %145 = tpu.matmul %144, %143, %cst_146 {dimension_numbers = #tpu.dot_dimension_numbers<[1], [0], [0], [1], [0, 0, 1, 1], [], []>} : vector<2x16xbf16>, vector<16x32xbf16>, vector<2x32xf32> -> vector<2x32xf32>
    %146 = arith.addf %140, %145 : vector<2x32xf32>
    %c6 = arith.constant 6 : index
    %c0_147 = arith.constant 0 : index
    %147 = tpu.strided_load %arg18[%c6, %c0_147] {strides = array<i32: 16, 1>} : memref<32x16xf32, #tpu.memory_space<vmem>>, vector<2x16xf32>
    %c6_148 = arith.constant 6 : index
    %c0_149 = arith.constant 0 : index
    %c0_150 = arith.constant 0 : index
    %148 = vector.load %arg10[%c6_148, %c0_149, %c0_150] : memref<10x16x32xbf16, #tpu.memory_space<vmem>>, vector<1x16x32xbf16>
    %149 = vector.shape_cast %148 : vector<1x16x32xbf16> to vector<16x32xbf16>
    %150 = arith.truncf %147 : vector<2x16xf32> to vector<2x16xbf16>
    %cst_151 = arith.constant dense<0.000000e+00> : vector<2x32xf32>
    %151 = tpu.matmul %150, %149, %cst_151 {dimension_numbers = #tpu.dot_dimension_numbers<[1], [0], [0], [1], [0, 0, 1, 1], [], []>} : vector<2x16xbf16>, vector<16x32xbf16>, vector<2x32xf32> -> vector<2x32xf32>
    %152 = arith.addf %146, %151 : vector<2x32xf32>
    %c7 = arith.constant 7 : index
    %c0_152 = arith.constant 0 : index
    %153 = tpu.strided_load %arg18[%c7, %c0_152] {strides = array<i32: 16, 1>} : memref<32x16xf32, #tpu.memory_space<vmem>>, vector<2x16xf32>
    %c7_153 = arith.constant 7 : index
    %c0_154 = arith.constant 0 : index
    %c0_155 = arith.constant 0 : index
    %154 = vector.load %arg10[%c7_153, %c0_154, %c0_155] : memref<10x16x32xbf16, #tpu.memory_space<vmem>>, vector<1x16x32xbf16>
    %155 = vector.shape_cast %154 : vector<1x16x32xbf16> to vector<16x32xbf16>
    %156 = arith.truncf %153 : vector<2x16xf32> to vector<2x16xbf16>
    %cst_156 = arith.constant dense<0.000000e+00> : vector<2x32xf32>
    %157 = tpu.matmul %156, %155, %cst_156 {dimension_numbers = #tpu.dot_dimension_numbers<[1], [0], [0], [1], [0, 0, 1, 1], [], []>} : vector<2x16xbf16>, vector<16x32xbf16>, vector<2x32xf32> -> vector<2x32xf32>
    %158 = arith.addf %152, %157 : vector<2x32xf32>
    %c8 = arith.constant 8 : index
    %c0_157 = arith.constant 0 : index
    %159 = tpu.strided_load %arg18[%c8, %c0_157] {strides = array<i32: 16, 1>} : memref<32x16xf32, #tpu.memory_space<vmem>>, vector<2x16xf32>
    %c8_158 = arith.constant 8 : index
    %c0_159 = arith.constant 0 : index
    %c0_160 = arith.constant 0 : index
    %160 = vector.load %arg10[%c8_158, %c0_159, %c0_160] : memref<10x16x32xbf16, #tpu.memory_space<vmem>>, vector<1x16x32xbf16>
    %161 = vector.shape_cast %160 : vector<1x16x32xbf16> to vector<16x32xbf16>
    %162 = arith.truncf %159 : vector<2x16xf32> to vector<2x16xbf16>
    %cst_161 = arith.constant dense<0.000000e+00> : vector<2x32xf32>
    %163 = tpu.matmul %162, %161, %cst_161 {dimension_numbers = #tpu.dot_dimension_numbers<[1], [0], [0], [1], [0, 0, 1, 1], [], []>} : vector<2x16xbf16>, vector<16x32xbf16>, vector<2x32xf32> -> vector<2x32xf32>
    %164 = arith.addf %158, %163 : vector<2x32xf32>
    %c9 = arith.constant 9 : index
    %c0_162 = arith.constant 0 : index
    %165 = tpu.strided_load %arg18[%c9, %c0_162] {strides = array<i32: 16, 1>} : memref<32x16xf32, #tpu.memory_space<vmem>>, vector<2x16xf32>
    %c9_163 = arith.constant 9 : index
    %c0_164 = arith.constant 0 : index
    %c0_165 = arith.constant 0 : index
    %166 = vector.load %arg10[%c9_163, %c0_164, %c0_165] : memref<10x16x32xbf16, #tpu.memory_space<vmem>>, vector<1x16x32xbf16>
    %167 = vector.shape_cast %166 : vector<1x16x32xbf16> to vector<16x32xbf16>
    %168 = arith.truncf %165 : vector<2x16xf32> to vector<2x16xbf16>
    %cst_166 = arith.constant dense<0.000000e+00> : vector<2x32xf32>
    %169 = tpu.matmul %168, %167, %cst_166 {dimension_numbers = #tpu.dot_dimension_numbers<[1], [0], [0], [1], [0, 0, 1, 1], [], []>} : vector<2x16xbf16>, vector<16x32xbf16>, vector<2x32xf32> -> vector<2x32xf32>
    %170 = arith.addf %164, %169 : vector<2x32xf32>
    %c0_167 = arith.constant 0 : index
    %c0_168 = arith.constant 0 : index
    %171 = vector.load %arg11[%c0_167, %c0_168] : memref<1x32xf32, #tpu.memory_space<vmem>>, vector<1x32xf32>
    %172 = vector.broadcast %171 : vector<1x32xf32> to vector<2x32xf32>
    %173 = arith.addf %170, %172 : vector<2x32xf32>
    %cst_169 = arith.constant 0.000000e+00 : f32
    %174 = vector.broadcast %cst_169 : f32 to vector<2x32xf32>
    %175 = arith.maximumf %173, %174 : vector<2x32xf32>
    %c0_170 = arith.constant 0 : index
    %c0_171 = arith.constant 0 : index
    %176 = vector.load %arg12[%c0_170, %c0_171] : memref<32x8xbf16, #tpu.memory_space<vmem>>, vector<32x8xbf16>
    %177 = arith.truncf %175 : vector<2x32xf32> to vector<2x32xbf16>
    %cst_172 = arith.constant dense<0.000000e+00> : vector<2x8xf32>
    %178 = tpu.matmul %177, %176, %cst_172 {dimension_numbers = #tpu.dot_dimension_numbers<[1], [0], [0], [1], [0, 0, 1, 1], [], []>} : vector<2x32xbf16>, vector<32x8xbf16>, vector<2x8xf32> -> vector<2x8xf32>
    %c0_173 = arith.constant 0 : index
    %c0_174 = arith.constant 0 : index
    %179 = vector.load %arg13[%c0_173, %c0_174] : memref<1x8xf32, #tpu.memory_space<vmem>>, vector<1x8xf32>
    %180 = vector.broadcast %179 : vector<1x8xf32> to vector<2x8xf32>
    %181 = arith.addf %178, %180 : vector<2x8xf32>
    %c0_175 = arith.constant 0 : index
    %c0_176 = arith.constant 0 : index
    %182 = vector.load %arg14[%c0_175, %c0_176] : memref<2x8xf32, #tpu.memory_space<vmem>>, vector<2x8xf32>
    tpu.vector_store %arg14[%c0_175, %c0_176], %181 {strides = array<i32>} : memref<2x8xf32, #tpu.memory_space<vmem>>, vector<2x8xf32>,
    return
  }
  func.func @transform_0(%arg0: i32) -> (i32, i32, i32) {
    %c0_i32 = arith.constant 0 : i32
    %c0_i32_0 = arith.constant 0 : i32
    %c0_i32_1 = arith.constant 0 : i32
    return %arg0, %c0_i32, %c0_i32_0 : i32, i32, i32
  }
  func.func @transform_1(%arg0: i32) -> (i32, i32, i32) {
    %c0_i32 = arith.constant 0 : i32
    %c0_i32_0 = arith.constant 0 : i32
    %c0_i32_1 = arith.constant 0 : i32
    %c0_i32_2 = arith.constant 0 : i32
    return %c0_i32, %c0_i32_0, %c0_i32_1 : i32, i32, i32
  }
  func.func @transform_2(%arg0: i32) -> (i32, i32) {
    %c0_i32 = arith.constant 0 : i32
    %c0_i32_0 = arith.constant 0 : i32
    %c0_i32_1 = arith.constant 0 : i32
    return %c0_i32, %c0_i32_0 : i32, i32
  }
  func.func @transform_3(%arg0: i32) -> (i32, i32, i32) {
    %c0_i32 = arith.constant 0 : i32
    %c0_i32_0 = arith.constant 0 : i32
    %c0_i32_1 = arith.constant 0 : i32
    %c0_i32_2 = arith.constant 0 : i32
    return %c0_i32, %c0_i32_0, %c0_i32_1 : i32, i32, i32
  }
  func.func @transform_4(%arg0: i32) -> (i32, i32) {
    %c0_i32 = arith.constant 0 : i32
    %c0_i32_0 = arith.constant 0 : i32
    %c0_i32_1 = arith.constant 0 : i32
    return %c0_i32, %c0_i32_0 : i32, i32
  }
  func.func @transform_5(%arg0: i32) -> (i32, i32, i32) {
    %c0_i32 = arith.constant 0 : i32
    %c0_i32_0 = arith.constant 0 : i32
    %c0_i32_1 = arith.constant 0 : i32
    %c0_i32_2 = arith.constant 0 : i32
    return %c0_i32, %c0_i32_0, %c0_i32_1 : i32, i32, i32
  }
  func.func @transform_6(%arg0: i32) -> (i32, i32) {
    %c0_i32 = arith.constant 0 : i32
    %c0_i32_0 = arith.constant 0 : i32
    %c0_i32_1 = arith.constant 0 : i32
    return %c0_i32, %c0_i32_0 : i32, i32
  }
  func.func @transform_7(%arg0: i32) -> (i32, i32, i32) {
    %c0_i32 = arith.constant 0 : i32
    %c0_i32_0 = arith.constant 0 : i32
    %c0_i32_1 = arith.constant 0 : i32
    %c0_i32_2 = arith.constant 0 : i32
    return %c0_i32, %c0_i32_0, %c0_i32_1 : i32, i32, i32
  }
  func.func @transform_8(%arg0: i32) -> (i32, i32) {
    %c0_i32 = arith.constant 0 : i32
    %c0_i32_0 = arith.constant 0 : i32
    %c0_i32_1 = arith.constant 0 : i32
    return %c0_i32, %c0_i32_0 : i32, i32
  }
  func.func @transform_9(%arg0: i32) -> (i32, i32, i32) {
    %c0_i32 = arith.constant 0 : i32
    %c0_i32_0 = arith.constant 0 : i32
    %c0_i32_1 = arith.constant 0 : i32
    %c0_i32_2 = arith.constant 0 : i32
    return %c0_i32, %c0_i32_0, %c0_i32_1 : i32, i32, i32
  }
  func.func @transform_10(%arg0: i32) -> (i32, i32) {
    %c0_i32 = arith.constant 0 : i32
    %c0_i32_0 = arith.constant 0 : i32
    %c0_i32_1 = arith.constant 0 : i32
    return %c0_i32, %c0_i32_0 : i32, i32
  }
  func.func @transform_11(%arg0: i32) -> (i32, i32) {
    %c0_i32 = arith.constant 0 : i32
    %c0_i32_0 = arith.constant 0 : i32
    %c0_i32_1 = arith.constant 0 : i32
    return %c0_i32, %c0_i32_0 : i32, i32
  }
  func.func @transform_12(%arg0: i32) -> (i32, i32) {
    %c0_i32 = arith.constant 0 : i32
    %c0_i32_0 = arith.constant 0 : i32
    %c0_i32_1 = arith.constant 0 : i32
    return %c0_i32, %c0_i32_0 : i32, i32
  }
  func.func @transform_13(%arg0: i32) -> (i32, i32) {
    %c0_i32 = arith.constant 0 : i32
    %c0_i32_0 = arith.constant 0 : i32
    return %arg0, %c0_i32 : i32, i32
  }
}

</mosaic_0001>

<bundles_post_ra>
// kernel: rwhar_forward.1
= control target key start
LH: loop header
LB: loop body
LE: loop exit
PB: predicated region body
PF: predicated region fallthrough
CT: control target
= control target key end

     0   :  { %vm399_vm0 = vcmask 1043456   ;;  %vm73_vm1 = vsmask.f32 3328  ;;  %vm74_vm2 = vsmask.f32 7440  ;;  %vm362_vm3 = vcmask 64512   ;;  %s5505_s0 = inlined_call_operand.vmem [shape: bf16[2,100,8], index: 0, kind: input, shape index: {}]   ;;  %s5506_s1 = inlined_call_operand.vmem [shape: bf16[5,8,16], index: 1, kind: input, shape index: {}]   ;;  %s5507_s2 = inlined_call_operand.vmem [shape: f32[1,16], index: 2, kind: input, shape index: {}]   ;;  %s5508_s3 = inlined_call_operand.vmem [shape: bf16[3,16,16], index: 3, kind: input, shape index: {}]   ;;  %s5509_s4 = inlined_call_operand.vmem [shape: f32[1,16], index: 4, kind: input, shape index: {}]   ;;  %s5510_s5 = inlined_call_operand.vmem [shape: bf16[3,16,16], index: 5, kind: input, shape index: {}]   ;;  %s5511_s6 = inlined_call_operand.vmem [shape: f32[1,16], index: 6, kind: input, shape index: {}]   ;;  %s5512_s7 = inlined_call_operand.vmem [shape: bf16[3,16,16], index: 7, kind: input, shape index: {}]   ;;  %s5513_s8 = inlined_call_operand.vmem [shape: f32[1,16], index: 8, kind: input, shape index: {}]   ;;  %s5514_s9 = inlined_call_operand.vmem [shape: bf16[10,16,32], index: 9, kind: input, shape index: {}]   ;;  %s5515_s10 = inlined_call_operand.vmem [shape: f32[1,32], index: 10, kind: input, shape index: {}]   ;;  %s5516_s11 = inlined_call_operand.vmem [shape: bf16[32,8], index: 11, kind: input, shape index: {}]   ;;  %s5517_s12 = inlined_call_operand.vmem [shape: f32[1,8], index: 12, kind: input, shape index: {}]   ;;  %s5518_s13 = inlined_call_operand.hbm [shape: f32[2,8], index: 13, kind: output, shape index: {}]  }
   0x1   :  { %v3431_v0 = vld [vmem:[%s5506_s1 + $0x4] sm:$0xf]  ;;  %v4355_v1 = vld [vmem:[%s5505_s0] sm:$0xf]  ;;  %v4367_v4 = vld [vmem:[%s5505_s0 + $0x8] sm:$0xf] }
   0x2   :  { %4198 = vmatprep.subr.msk.bf16.mxu0 %vm399_vm0, %v3431_v0  ;;  %v401_v2 = vsel %vm399_vm0, %v3431_v0, 0  ;;  %v4362_v3 = vld [vmem:[%s5505_s0 + $0x4] sm:$0xf]  ;;  %v77_v5 = vshrl.u32 %v4355_v1, 16  ;;  %4199 = vmatprep.subr.msk.bf16.mxu1 %vm399_vm0, %v3431_v0  ;;  %v80_v6 = vshll.u32 %v4355_v1, 16  ;;  %v96_v10 = vshll.u32 %v4367_v4, 16  ;;  %vm4401_vm4 = vmor %vm73_vm1, %vm74_vm2 }
   0x3   :  { %3785 = vmatpush3.bf16.msra.mxu0 %v401_v2  ;;  %v86_v7 = vshll.u32 %v4362_v3, 16  ;;  %4061 = vmatpush3.bf16.msra.mxu1 %v401_v2  ;;  %v90_v9 = vshrl.u32 %v4362_v3, 16  ;;  %v100_v11 = vshrl.u32 %v4367_v4, 16  ;;  %v70_v12 = vld [vmem:[%s5506_s1] sm:$0xf] }
   0x4   :  { %v79_v8 = vrot.slane %v77_v5, 4  ;;  %v82_v13 = vrot.slane %v80_v6, 5  ;;  %4200 = vmatprep.subr.msk.bf16.mxu0 %vm399_vm0, %v70_v12  ;;  %v4385_v15 = vld [vmem:[%s5505_s0 + $0xc] sm:$0xf]  ;;  %v98_v17 = vrot.slane %v96_v10, 5  ;;  %v629_v51 = vsel %vm399_vm0, %v70_v12, 0 }
   0x5   :  { %v88_v14 = vrot.slane %v86_v7, 5  ;;  %v92_v16 = vrot.slane %v90_v9, 4  ;;  %v102_v18 = vrot.slane %v100_v11, 4  ;;  %v4396_v19 = vld [vmem:[%s5505_s0 + $0x10] sm:$0xf]  ;;  %v106_v21 = vshll.u32 %v4385_v15, 16 }
   0x6   :  { %v83_v20 = vor.u32 %v82_v13, %v79_v8  ;;  %v110_v22 = vshrl.u32 %v4385_v15, 16  ;;  %v116_v26 = vshll.u32 %v4396_v19, 16  ;;  %v120_v27 = vshrl.u32 %v4396_v19, 16  ;;  %v4410_v32 = vld [vmem:[%s5505_s0 + $0x14] sm:$0xf] }
   0x7   :  { %v93_v24 = vor.u32 %v92_v16, %v88_v14  ;;  %v103_v25 = vor.u32 %v102_v18, %v98_v17  ;;  %v108_v29 = vrot.slane %v106_v21, 5  ;;  %v1098_v36 = vrot.slane %v106_v21, 6  ;;  %v4417_v40 = vld [vmem:[%s5505_s0 + $0x18] sm:$0xf]  ;;  %v4430_v50 = vld [vmem:[%s5505_s0 + $0x1c] sm:$0xf] }
   0x8   :  { %v84_v28 = vrot.slane %v83_v20, 4  ;;  %v112_v30 = vrot.slane %v110_v22, 4  ;;  %v1097_v31 = vrot.slane %v110_v22, 5  ;;  %v118_v35 = vrot.slane %v116_v26, 5  ;;  %v4439_v55 = vld [vmem:[%s5505_s0 + $0x20] sm:$0xf] }
   0x9   :  { %v94_v33 = vrot.slane %v93_v24, 4  ;;  %v104_v34 = vrot.slane %v103_v25, 4  ;;  %v1103_v39 = vrot.slane %v116_v26, 6  ;;  %v122_v41 = vrot.slane %v120_v27, 4  ;;  %v4450_v60 = vld [vmem:[%s5505_s0 + $0x24] sm:$0xf] }
   0xa   :  { %v89_v37 = vsel %vm4401_vm4, %v84_v28, %v88_v14  ;;  %v113_v38 = vor.u32 %v112_v30, %v108_v29  ;;  %v4423_v44 = vor.u32 %v1098_v36, %v1097_v31  ;;  %v126_v45 = vshll.u32 %v4410_v32, 16  ;;  %v4465_v12 = vld [vmem:[%s5505_s0 + $0x28] sm:$0xf] }
   0xb   :  { %v99_v42 = vsel %vm4401_vm4, %v94_v33, %v98_v17  ;;  %v109_v43 = vsel %vm4401_vm4, %v104_v34, %v108_v29  ;;  %v123_v48 = vor.u32 %v122_v41, %v118_v35  ;;  %v130_v49 = vshrl.u32 %v4410_v32, 16  ;;  %v4470_v13 = vld [vmem:[%s5506_s1 + $0x8] sm:$0xf]  ;;  %v4491_v29 = vld [vmem:[%s5505_s0 + $0x2c] sm:$0xf] }
   0xc   :  { %v3432_v46 = vcombine.low %v89_v37, %v99_v42  ;;  %v114_v47 = vrot.slane %v113_v38, 4  ;;  %v128_v52 = vrot.slane %v126_v45, 5  ;;  %v136_v53 = vshll.u32 %v4417_v40, 16  ;;  %v4510_v41 = vld [vmem:[%s5505_s0 + $0x34] sm:$0xf] }
   0xd   :  { %v1102_v54 = vrot.slane %v120_v27, 5  ;;  %v124_v57 = vrot.slane %v123_v48, 4  ;;  %v132_v58 = vrot.slane %v130_v49, 4  ;;  %v140_v59 = vshrl.u32 %v4417_v40, 16  ;;  %v4518_v48 = vld [vmem:[%s5505_s0 + $0x38] sm:$0xf] }
   0xe   :  { %3786 = vmatprep.mubr.msk.bf16.mxu0 %vm362_vm3, %v3432_v46  ;;  %v119_v56 = vsel %vm4401_vm4, %v114_v47, %v118_v35  ;;  %v138_v62 = vrot.slane %v136_v53, 5  ;;  %v146_v0 = vshll.u32 %v4430_v50, 16  ;;  %v150_v8 = vshrl.u32 %v4430_v50, 16  ;;  %v4502_v35 = vld [vmem:[%s5505_s0 + $0x30] sm:$0x1] }
   0xf   :  { %v3433_v61 = vcombine.low %v109_v43, %v119_v56  ;;  %v4454_v63 = vor.u32 %v1103_v39, %v1102_v54  ;;  %v129_v2 = vsel %vm4401_vm4, %v124_v57, %v128_v52  ;;  %v133_v5 = vor.u32 %v132_v58, %v128_v52  ;;  %v4528_v57 = vld [vmem:[%s5505_s0 + $0x3c] sm:$0xf] }
  0x10   :  { %v142_v6 = vrot.slane %v140_v59, 4  ;;  %v148_v14 = vrot.slane %v146_v0, 5  ;;  %v156_v16 = vshll.u32 %v4439_v55, 16  ;;  %v160_v17 = vshrl.u32 %v4439_v55, 16 }
  0x11   :  { %3787 = vmatmul.mubr.msk.bf16.vlgmr.msra.gmra.mrb[0].mxu0 %vm362_vm3, %v3433_v61  ;;  %v166_v18 = vshll.u32 %v4450_v60, 16  ;;  %v134_v20 = vrot.slane %v133_v5, 4  ;;  %v152_v22 = vrot.slane %v150_v8, 4  ;;  %v170_v24 = vshrl.u32 %v4450_v60, 16 }
  0x12   :  { %3811 = vmatpush3.bf16.msra.mxu0 %v629_v51  ;;  %v143_v21 = vor.u32 %v142_v6, %v138_v62  ;;  %v158_v25 = vrot.slane %v156_v16, 5  ;;  %v162_v26 = vrot.slane %v160_v17, 4  ;;  %v176_v28 = vshll.u32 %v4465_v12, 16 }
  0x13   :  { %v168_v27 = vrot.slane %v166_v18, 5  ;;  %4201 = vmatprep.subr.msk.bf16.mxu0 %vm399_vm0, %v4470_v13  ;;  %v139_v30 = vsel %vm4401_vm4, %v134_v20, %v138_v62  ;;  %v153_v33 = vor.u32 %v152_v22, %v148_v14  ;;  %v172_v34 = vrot.slane %v170_v24, 4 }
  0x14   :  { %v144_v31 = vrot.slane %v143_v21, 4  ;;  %v3434_v36 = vcombine.low %v129_v2, %v139_v30  ;;  %v163_v37 = vor.u32 %v162_v26, %v158_v25  ;;  %v178_v38 = vrot.slane %v176_v28, 5  ;;  %v4542_v21 = vld [vmem:[%s5505_s0 + $0x40] sm:$0xf] }
  0x15   :  { %v180_v39 = vshrl.u32 %v4465_v12, 16  ;;  %v154_v43 = vrot.slane %v153_v33, 4  ;;  %v173_v46 = vor.u32 %v172_v34, %v168_v27  ;;  %v186_v47 = vshll.u32 %v4491_v29, 16 }
  0x16   :  { %v149_v42 = vsel %vm4401_vm4, %v144_v31, %v148_v14  ;;  %3790 = vmatprep.mubr.msk.bf16.mxu0 %vm362_vm3, %v3434_v36  ;;  %v164_v51 = vrot.slane %v163_v37, 4  ;;  %v190_v54 = vshrl.u32 %v4491_v29, 16  ;;  %v196_v56 = vshll.u32 %v4502_v35, 16 }
  0x17   :  { %v182_v52 = vrot.slane %v180_v39, 4  ;;  %v159_v58 = vsel %vm4401_vm4, %v154_v43, %v158_v25  ;;  %v174_v61 = vrot.slane %v173_v46, 4  ;;  %v188_v62 = vrot.slane %v186_v47, 5 }
  0x18   :  { %v201_v2 = vshrl.u32 %v4510_v41, 16  ;;  %v3435_v5 = vcombine.low %v149_v42, %v159_v58  ;;  %v169_v6 = vsel %vm4401_vm4, %v164_v51, %v168_v27  ;;  %v192_v20 = vrot.slane %v190_v54, 4  ;;  %v4550_v27 = vld [vmem:[%s5505_s0 + $0x44] sm:$0xf] }
  0x19   :  { %v183_v14 = vor.u32 %v182_v52, %v178_v38  ;;  %v179_v22 = vsel %vm4401_vm4, %v174_v61, %v178_v38  ;;  %v198_v25 = vrot.slane %v196_v56, 5  ;;  %v204_v30 = vshll.u32 %v4510_v41, 16 }
  0x1a   :  { %v203_v26 = vrot.slane %v201_v2, 4  ;;  %3791 = vmatmul.mubr.msk.bf16.gmra.mrb[4].mxu0 %vm362_vm3, %v3435_v5  ;;  %v3436_v31 = vcombine.low %v169_v6, %v179_v22  ;;  %v193_v34 = vor.u32 %v192_v20, %v188_v62  ;;  %v5524_v36 = vshll.u32 %v4518_v48, 16 }
  0x1b   :  { %v184_v33 = vrot.slane %v183_v14, 4  ;;  %v206_v37 = vrot.slane %v204_v30, 5  ;;  %v214_v42 = vshrl.u32 %v4518_v48, 16  ;;  %v5519_v38 = vshll.u32 %v4528_v57, 16 }
  0x1c   :  { %v5523_v43 = vshrl.u32 %v4528_v57, 16  ;;  %3794 = vmatprep.mubr.msk.bf16.mxu0 %vm362_vm3, %v3436_v31  ;;  %v194_v51 = vrot.slane %v193_v34, 4  ;;  %v212_v52 = vrot.slane %v5524_v36, 5  ;;  %v5521_v56 = vshll.u32 %v4542_v21, 16 }
  0x1d   :  { %v189_v46 = vsel %vm4401_vm4, %v184_v33, %v188_v62  ;;  %v207_v58 = vor.u32 %v206_v37, %v203_v26  ;;  %v216_v61 = vrot.slane %v214_v42, 4  ;;  %v222_v2 = vrot.slane %v5519_v38, 5 }
  0x1e   :  { %v226_v5 = vrot.slane %v5523_v43, 4  ;;  %v199_v6 = vsel %vm4401_vm4, %v194_v51, %v198_v25  ;;  %v232_v62 = vrot.slane %v5521_v56, 5  ;;  %v5522_v14 = vshrl.u32 %v4542_v21, 16 }
  0x1f   :  { %v5520_v20 = vshll.u32 %v4550_v27, 16  ;;  %v3437_v22 = vcombine.low %v189_v46, %v199_v6  ;;  %v208_v26 = vrot.slane %v207_v58, 4  ;;  %v217_v30 = vor.u32 %v216_v61, %v212_v52 }
  0x20   :  { %v227_v31 = vor.u32 %v226_v5, %v222_v2  ;;  %v236_v33 = vrot.slane %v5522_v14, 4 }
  0x21   :  { %v213_v34 = vsel %vm4401_vm4, %v208_v26, %v212_v52  ;;  %v218_v37 = vrot.slane %v217_v30, 4  ;;  %v4581_v25 = vrot.slane %v5520_v20, 5  ;;  %v3456_v26 = vcombine.low %v4355_v1, %v4362_v3 }
  0x22   :  { %v228_v38 = vrot.slane %v227_v31, 4  ;;  %3795 = vmatmul.mubr.msk.bf16.gmra.mrb[8].mxu0 %vm362_vm3, %v3437_v22  ;;  %v237_v51 = vor.u32 %v236_v33, %v232_v62  ;;  %v4605_v22 = vld [vmem:[%s5506_s1 + $0xc] sm:$0xf] }
  0x23   :  { %v223_v46 = vsel %vm4401_vm4, %v218_v37, %v222_v2  ;;  %v3457_v2 = vcombine.low %v4367_v4, %v4385_v15 }
  0x24   :  { %v3438_v58 = vcombine.low %v213_v34, %v223_v46  ;;  %v233_v61 = vsel %vm4401_vm4, %v228_v38, %v232_v62  ;;  %v238_v5 = vrot.slane %v237_v51, 4  ;;  %v3458_v38 = vcombine.low %v4396_v19, %v4410_v32 }
  0x25   :  { %v918_v62 = vsel %vm399_vm0, %v4470_v13, 0 }
  0x26   :  { %3798 = vmatprep.mubr.msk.bf16.mxu0 %vm362_vm3, %v3438_v58  ;;  %v243_v52 = vsel %vm4401_vm4, %v238_v5, %v4581_v25 }
  0x27   :  { %v3439_v6 = vcombine.low %v233_v61, %v243_v52 }
  0x2a   :  { %3799 = vmatmul.mubr.msk.bf16.gmra.mrb[12].mxu0 %vm362_vm3, %v3439_v6 }
  0x2b   :  { %3812 = vmatprep.mubr.msk.bf16.mxu0 %vm362_vm3, %v3456_v26 }
  0x32   :  { %3813 = vmatmul.mubr.msk.bf16.vlgmr.msra.gmra.mrb[0].mxu0 %vm362_vm3, %v3457_v2 }
  0x33   :  { %18 = vsyncpa [#allocation7], 0  ;;  %3837 = vmatpush3.bf16.msra.mxu0 %v918_v62  ;;  %3816 = vmatprep.mubr.msk.bf16.mxu0 %vm362_vm3, %v3458_v38  ;;  %v1088_v1 = vrot.slane %v86_v7, 6  ;;  %v3459_v13 = vcombine.low %v4417_v40, %v4430_v50  ;;  %v1087_v30 = vrot.slane %v90_v9, 5  ;;  %v1093_v31 = vrot.slane %v96_v10, 6  ;;  %s4278_s19 = smov [#allocation6]  }
  0x34   :  { %4202 = vmatprep.subr.msk.bf16.mxu0 %vm399_vm0, %v4605_v22  ;;  %v1101_v33 = vrot.slane %v4423_v44, 4  ;;  %v3460_v34 = vcombine.low %v4439_v55, %v4450_v60  ;;  %v4625_v37 = vld [vmem:[%s5505_s0 + $0x48] sm:$0xf]  ;;  %v4630_v7 = vld [vmem:[%s5505_s0 + $0x4c] sm:$0xf]  ;;  %v3461_v10 = vcombine.low %v4465_v12, %v4491_v29  ;;  %v3462_v61 = vcombine.low %v4510_v41, %v4518_v48  ;;  %s3423_s20 = sshll.u32 %s4278_s19, 4  ;;  %s3424_s20 = int_to_ptr.vmem [resolvable:$true] %s3423_s20 }
  0x35   :  { %v4635_v9 = vld [vmem:[%s5505_s0 + $0x50] sm:$0xf]  ;;  %v4642_v51 = vld [vmem:[%s5505_s0 + $0x54] sm:$0xf]  ;;  %v4647_v46 = vld [vmem:[%s5505_s0 + $0x58] sm:$0xf]  ;;  %v3463_v5 = vcombine.low %v4528_v57, %v4542_v21  ;;  %v3464_v6 = vcombine.low %v4550_v27, %v4625_v37  ;;  %p4257_p1 = scmp.lt.s32.totalorder %s3424_s20, %s3424_s20 }
  0x36   :  { %v4652_v58 = vld [vmem:[%s5505_s0] sm:$0xe]  ;;  %v771_v52 = vrot.slane %v4362_v3, 5  ;;  %vm1075_vm5 = vsmask.f32 2304  ;;  %v1092_v43 = vrot.slane %v100_v11, 5 }
  0x37   :  { %vm1076_vm6 = vsmask.f32 6416  ;;  %v1079_v26 = vshrl.u32 %v4652_v58, 16  ;;  %v1082_v2 = vshll.u32 %v4652_v58, 16  ;;  %v1106_v41 = vrot.slane %v4454_v63, 4 }
  0x38   :  { %vm4670_vm7 = vmor %vm1075_vm5, %vm1076_vm6  ;;  %v4679_v38 = vrot.slane %v771_v52, 4  ;;  %v1108_v11 = vrot.slane %v126_v45, 6  ;;  %v1113_v20 = vrot.slane %v136_v53, 6  ;;  %v1123_v53 = vrot.slane %v156_v16, 6 }
  0x39   :  { %v1081_v56 = vrot.slane %v1079_v26, 5  ;;  %v1084_v14 = vrot.slane %v1082_v2, 6  ;;  %v4684_v62 = vsel %vm4670_vm7, %v1101_v33, %v4454_v63  ;;  %v1107_v26 = vrot.slane %v130_v49, 5 }
  0x3a   :  { %3817 = vmatmul.mubr.msk.bf16.gmra.mrb[4].mxu0 %vm362_vm3, %v3459_v13  ;;  %v1112_v2 = vrot.slane %v140_v59, 5  ;;  %v1117_v33 = vrot.slane %v150_v8, 5  ;;  %v1118_v63 = vrot.slane %v146_v0, 6  ;;  %v1122_v59 = vrot.slane %v160_v17, 5  ;;  %v4244_v13 = vld [vmem:[%s5505_s0 + $0x10] sm:$0xf] }
  0x3b   :  { %3820 = vmatprep.mubr.msk.bf16.mxu0 %vm362_vm3, %v3460_v34  ;;  %v1089_v34 = vor.u32 %v1088_v1, %v1087_v30  ;;  %v1085_v1 = vor.u32 %v1084_v14, %v1081_v56  ;;  %v1094_v30 = vor.u32 %v1093_v31, %v1092_v43  ;;  %v1109_v14 = vor.u32 %v1108_v11, %v1107_v26 }
  0x3c   :  { %v1114_v45 = vor.u32 %v1113_v20, %v1112_v2  ;;  %v1119_v31 = vor.u32 %v1118_v63, %v1117_v33  ;;  %vm766_vm8 = vcmask 1042432   ;;  %vm767_vm9 = vcmask 1046532  }
  0x3d   :  { %v1091_v36 = vrot.slane %v1089_v34, 4  ;;  %v1086_v56 = vrot.slane %v1085_v1, 4  ;;  %v1096_v49 = vrot.slane %v1094_v30, 4  ;;  %v1111_v20 = vrot.slane %v1109_v14, 4  ;;  %vm4807_vm10 = vmor %vm766_vm8, %vm767_vm9 }
  0x3e   :  { %v1116_v17 = vrot.slane %v1114_v45, 4  ;;  %v1127_v1 = vrot.slane %v170_v24, 5  ;;  %v1132_v2 = vrot.slane %v180_v39, 5  ;;  %v1133_v24 = vrot.slane %v176_v28, 6 }
  0x3f   :  { %v1095_v43 = vsel %vm4670_vm7, %v1091_v36, %v1094_v30  ;;  %v1090_v0 = vsel %vm4670_vm7, %v1086_v56, %v1089_v34  ;;  %v4712_v8 = vsel %vm4670_vm7, %v1096_v49, %v4423_v44  ;;  %v4716_v36 = vsel %vm4670_vm7, %v1106_v41, %v1109_v14  ;;  %v4733_v30 = vld [vmem:[%s5505_s0 + $0x30] sm:$0x3] }
  0x40   :  { %v3509_v16 = vcombine.low %v4712_v8, %v4684_v62  ;;  %v4724_v34 = vsel %vm4670_vm7, %v1111_v20, %v1114_v45  ;;  %v1124_v44 = vor.u32 %v1123_v53, %v1122_v59  ;;  %v1128_v41 = vrot.slane %v166_v18, 6 }
  0x41   :  { %v3510_v26 = vcombine.low %v4716_v36, %v4724_v34  ;;  %v4739_v11 = vsel %vm4670_vm7, %v1116_v17, %v1119_v31  ;;  %v1137_v56 = vrot.slane %v190_v54, 5  ;;  %v1134_v49 = vor.u32 %v1133_v24, %v1132_v2 }
  0x42   :  { %3821 = vmatmul.mubr.msk.bf16.gmra.mrb[8].mxu0 %vm362_vm3, %v3461_v10  ;;  %v4718_v10 = vcombine.low %v1090_v0, %v1095_v43  ;;  %v1126_v33 = vrot.slane %v1124_v44, 4  ;;  %v1129_v63 = vor.u32 %v1128_v41, %v1127_v1  ;;  %v4754_v43 = vld [vmem:[%s5505_s0 + $0x34] sm:$0xe]  ;;  %v1138_v28 = vrot.slane %v186_v47, 6 }
  0x43   :  { %3824 = vmatprep.mubr.msk.bf16.mxu0 %vm362_vm3, %v3462_v61  ;;  %v1121_v61 = vrot.slane %v1119_v31, 4  ;;  %v1143_v14 = vshrl.u32 %v4733_v30, 16  ;;  %v1146_v54 = vshll.u32 %v4733_v30, 16  ;;  %v1152_v59 = vshrl.u32 %v4754_v43, 16 }
  0x44   :  { %v4763_v45 = vsel %vm4670_vm7, %v1126_v33, %v1129_v63  ;;  %v1131_v31 = vrot.slane %v1129_v63, 4  ;;  %v1136_v53 = vrot.slane %v1134_v49, 4  ;;  %v1139_v0 = vor.u32 %v1138_v28, %v1137_v56 }
  0x45   :  { %v4747_v18 = vsel %vm4670_vm7, %v1121_v61, %v1124_v44  ;;  %v1145_v20 = vrot.slane %v1143_v14, 5  ;;  %v1155_v47 = vshll.u32 %v4754_v43, 16  ;;  %v1148_v61 = vrot.slane %v1146_v54, 6 }
  0x46   :  { %v4778_v17 = vsel %vm4670_vm7, %v1131_v31, %v1134_v49  ;;  %v1154_v44 = vrot.slane %v1152_v59, 5  ;;  %v1160_v1 = vrot.slane %v214_v42, 5  ;;  %v4786_v41 = vsel %vm4670_vm7, %v1136_v53, %v1139_v0 }
  0x47   :  { %v1141_v2 = vrot.slane %v1139_v0, 4  ;;  %v1157_v24 = vrot.slane %v1155_v47, 6  ;;  %v1149_v33 = vor.u32 %v1148_v61, %v1145_v20  ;;  %v5543_v56 = vshrl.u32 %v4528_v57, 16 }
  0x48   :  { %v5544_v28 = vshll.u32 %v4528_v57, 16  ;;  %v244_v31 = vshrl.u32 %v4550_v27, 16  ;;  %v5545_v54 = vshrl.u32 %v4542_v21, 16  ;;  %v5546_v53 = vshll.u32 %v4542_v21, 16 }
  0x49   :  { %v1165_v49 = vrot.slane %v5543_v56, 5  ;;  %v1158_v42 = vor.u32 %v1157_v24, %v1154_v44  ;;  %v4801_v20 = vsel %vm4670_vm7, %v1141_v2, %v1149_v33  ;;  %v5556_v44 = vcombine.low %v4739_v11, %v4747_v18 }
  0x4a   :  { %3825 = vmatmul.mubr.msk.bf16.gmra.mrb[12].mxu0 %vm362_vm3, %v3463_v5  ;;  %v1166_v14 = vrot.slane %v5544_v28, 6  ;;  %v1170_v59 = vrot.slane %v5545_v54, 5  ;;  %v1171_v0 = vrot.slane %v5546_v53, 6  ;;  %v1175_v2 = vrot.slane %v244_v31, 5 }
  0x4b   :  { %3828 = vmatprep.mubr.msk.bf16.mxu0 %vm362_vm3, %v3464_v6  ;;  %v5542_v6 = vshll.u32 %v4518_v48, 16  ;;  %v1159_v28 = vrot.slane %v1158_v42, 4  ;;  %v5551_v42 = vcombine.low %v4642_v51, %v4647_v46  ;;  %v5557_v62 = vcombine.low %v4763_v45, %v4778_v17 }
  0x4c   :  { %v1167_v61 = vor.u32 %v1166_v14, %v1165_v49  ;;  %v1172_v54 = vor.u32 %v1171_v0, %v1170_v59  ;;  %v4830_v59 = vld [vmem:[%s5505_s0 + $0x5c] sm:$0xf]  ;;  %v4835_v0 = vld [vmem:[%s5505_s0 + $0x60] sm:$0xf]  ;;  %v5558_v36 = vshrl.u32 %v4630_v7, 16  ;;  %v5559_v34 = vshll.u32 %v4630_v7, 16 }
  0x4d   :  { %v1161_v63 = vrot.slane %v5542_v6, 6  ;;  %v5547_v6 = vshll.u32 %v4550_v27, 16  ;;  %v5562_v45 = vshrl.u32 %v4647_v46, 16  ;;  %vm1460_vm11 = vcmask 1041408  }
  0x4e   :  { %v1174_v14 = vrot.slane %v1172_v54, 4  ;;  %vm1461_vm12 = vcmask 1045508   ;;  %vm1822_vm14 = vcmask 130048   ;;  %vm4277_vm15 = vmmov 0  }
  0x4f   :  { %v1162_v47 = vor.u32 %v1161_v63, %v1160_v1  ;;  %v1176_v56 = vrot.slane %v5547_v6, 6  ;;  %v1169_v1 = vrot.slane %v1167_v61, 4  ;;  %v5550_v63 = vcombine.low %v4630_v7, %v4635_v9  ;;  %vm5114_vm13 = vmor %vm1460_vm11, %vm1461_vm12 }
  0x50   :  { %v1200_v17 = vrot.slane %v5562_v45, 5  ;;  %vm3415_vm1 = vcmask 58368  }
  0x51   :  { %v1164_v33 = vrot.slane %v1162_v47, 4  ;;  %v1163_v49 = vsel %vm4670_vm7, %v1159_v28, %v1162_v47  ;;  %v4821_v53 = vor.u32 %v1176_v56, %v1175_v2  ;;  %v5552_v47 = vrot.slane %v4652_v58, 9 }
  0x52   :  { %3829 = vmatmul.mubr.msk.bf16.gmra.mrb[16].mxu0 %vm362_vm3, %v5550_v63  ;;  %v777_v56 = vrot.slane %v4385_v15, 5  ;;  %v4848_v2 = vsel %vm4670_vm7, %v1169_v1, %v1172_v54  ;;  %v5553_v63 = vrot.slane %v4367_v4, 5  ;;  %v783_v58 = vrot.slane %v4410_v32, 5 }
  0x53   :  { %3832 = vmatprep.mubr.msk.bf16.mxu0 %vm362_vm3, %v5551_v42  ;;  %v772_v6 = vsel %vm4807_vm10, %v5552_v47, %v771_v52  ;;  %v1168_v28 = vsel %vm4670_vm7, %v1164_v33, %v1167_v61  ;;  %v4861_v15 = vsel %vm4670_vm7, %v1174_v14, %v4821_v53  ;;  %v3467_v61 = vcombine.low %v4830_v59, %v4835_v0 }
  0x54   :  { %v775_v3 = vsel %vm4807_vm10, %v4679_v38, %v5553_v63  ;;  %v4856_v42 = vcombine.low %v1163_v49, %v1168_v28  ;;  %v780_v54 = vrot.slane %v4396_v19, 5  ;;  %v5554_v33 = vmov %v5553_v63 }
  0x55   :  { %v776_v38 = vrot.slane %v5554_v33, 4  ;;  %v3483_v1 = vcombine.low %v772_v6, %v775_v3  ;;  %v779_v32 = vrot.slane %v777_v56, 4  ;;  %v785_v47 = vrot.slane %v783_v58, 4 }
  0x56   :  { %v782_v49 = vrot.slane %v780_v54, 4  ;;  %v786_v28 = vrot.slane %v4417_v40, 5  ;;  %v789_v19 = vrot.slane %v4430_v50, 5  ;;  %v795_v40 = vrot.slane %v4450_v60, 5  ;;  %v4892_v60 = vld [vmem:[%s5506_s1 + $0x10] sm:$0xf] }
  0x57   :  { %v778_v14 = vsel %vm4807_vm10, %v776_v38, %v777_v56  ;;  %v781_v63 = vsel %vm4807_vm10, %v779_v32, %v780_v54  ;;  %v1299_v33 = vsel %vm399_vm0, %v4605_v22, 0  ;;  %v798_v50 = vrot.slane %v4465_v12, 5 }
  0x58   :  { %v784_v4 = vsel %vm4807_vm10, %v782_v49, %v783_v58  ;;  %v787_v6 = vsel %vm4807_vm10, %v785_v47, %v786_v28  ;;  %v3484_v3 = vcombine.low %v778_v14, %v781_v63  ;;  %v788_v38 = vrot.slane %v786_v28, 4 }
  0x59   :  { %v3485_v56 = vcombine.low %v784_v4, %v787_v6  ;;  %v797_v32 = vrot.slane %v795_v40, 4  ;;  %v801_v58 = vrot.slane %v4491_v29, 5  ;;  %v808_v49 = vrot.slane %v4518_v48, 5 }
  0x5a   :  { %3833 = vmatmul.mubr.msk.bf16.gmra.mrb[20].mxu0 %vm362_vm3, %v3467_v61  ;;  %v792_v61 = vrot.slane %v4439_v55, 5  ;;  %v811_v55 = vrot.slane %v4528_v57, 5  ;;  %v814_v22 = vrot.slane %v4542_v21, 5  ;;  %v790_v12 = vsel %vm4807_vm10, %v788_v38, %v789_v19 }
  0x5b   :  { %3838 = vmatprep.mubr.msk.bf16.mxu0 %vm362_vm3, %v3483_v1  ;;  %v791_v1 = vrot.slane %v789_v19, 4  ;;  %v804_v47 = vrot.slane %v4502_v35, 5  ;;  %v799_v14 = vsel %vm4807_vm10, %v797_v32, %v798_v50  ;;  %v800_v57 = vrot.slane %v798_v50, 4 }
  0x5c   :  { %v794_v54 = vrot.slane %v792_v61, 4  ;;  %v803_v63 = vrot.slane %v801_v58, 4  ;;  %v3481_v4 = vrot.slane %v4754_v43, 9  ;;  %v810_v6 = vrot.slane %v808_v49, 4 }
  0x5d   :  { %v793_v29 = vsel %vm4807_vm10, %v791_v1, %v792_v61  ;;  %v817_v61 = vrot.slane %v4550_v27, 5  ;;  %v1612_v23 = vsel %vm399_vm0, %v4892_v60, 0  ;;  %v1179_v18 = vrot.slane %v4821_v53, 4 }
  0x5e   :  { %v796_v28 = vsel %vm4807_vm10, %v794_v54, %v795_v40  ;;  %v3486_v19 = vcombine.low %v790_v12, %v793_v29  ;;  %v802_v40 = vsel %vm4807_vm10, %v800_v57, %v801_v58  ;;  %v809_v38 = vsel %vm4807_vm10, %v3481_v4, %v808_v49 }
  0x5f   :  { %v3487_v35 = vcombine.low %v796_v28, %v799_v14  ;;  %v812_v1 = vsel %vm4807_vm10, %v810_v6, %v811_v55  ;;  %v819_v43 = vrot.slane %v817_v61, 4  ;;  %v820_v54 = vrot.slane %v4625_v37, 5 }
  0x60   :  { %v823_v58 = vrot.slane %v4630_v7, 5  ;;  %v826_v49 = vrot.slane %v4635_v9, 5  ;;  %v5537_v57 = vshll.u32 %v4625_v37, 16  ;;  %v5525_v4 = vshll.u32 %v4630_v7, 16 }
  0x61   :  { %v822_v28 = vrot.slane %v820_v54, 4 }
  0x62   :  { %3839 = vmatmul.mubr.msk.bf16.vlgmr.msra.gmra.mrb[0].mxu0 %vm362_vm3, %v3484_v3  ;;  %v813_v3 = vrot.slane %v811_v55, 4  ;;  %v3489_v55 = vcombine.low %v809_v38, %v812_v1  ;;  %v825_v14 = vrot.slane %v823_v58, 4  ;;  %v828_v6 = vrot.slane %v826_v49, 4 }
  0x63   :  { %3863 = vmatpush3.bf16.msra.mxu0 %v1299_v33  ;;  %3842 = vmatprep.mubr.msk.bf16.mxu0 %vm362_vm3, %v3485_v56  ;;  %v816_v33 = vrot.slane %v814_v22, 4  ;;  %v805_v56 = vsel %vm4807_vm10, %v803_v63, %v804_v47  ;;  %v821_v47 = vsel %vm4807_vm10, %v819_v43, %v820_v54  ;;  %v254_v63 = vshrl.u32 %v4625_v37, 16 }
  0x64   :  { %4203 = vmatprep.subr.msk.bf16.mxu0 %vm399_vm0, %v4892_v60  ;;  %v4923_v32 = vsel %vm4807_vm10, %v813_v3, %v814_v22  ;;  %v3488_v12 = vcombine.low %v802_v40, %v805_v56  ;;  %v829_v22 = vrot.slane %v4642_v51, 5  ;;  %v5526_v3 = vshrl.u32 %v4630_v7, 16 }
  0x65   :  { %v818_v50 = vsel %vm4807_vm10, %v816_v33, %v817_v61  ;;  %v246_v33 = vrot.slane %v244_v31, 4  ;;  %v5527_v61 = vshll.u32 %v4635_v9, 16  ;;  %v256_v40 = vrot.slane %v254_v63, 4 }
  0x66   :  { %v3490_v29 = vcombine.low %v4923_v32, %v818_v50  ;;  %v262_v56 = vrot.slane %v5525_v4, 5  ;;  %v824_v38 = vsel %vm4807_vm10, %v822_v28, %v823_v58  ;;  %v832_v1 = vrot.slane %v4647_v46, 5 }
  0x67   :  { %v5528_v43 = vshrl.u32 %v4635_v9, 16  ;;  %v247_v31 = vor.u32 %v246_v33, %v4581_v25  ;;  %v835_v54 = vrot.slane %v4830_v59, 5  ;;  %v266_v50 = vrot.slane %v5526_v3, 4 }
  0x68   :  { %v272_v52 = vrot.slane %v5527_v61, 5  ;;  %v827_v58 = vsel %vm4807_vm10, %v825_v14, %v826_v49  ;;  %v5529_v28 = vshll.u32 %v4642_v51, 16  ;;  %v838_v33 = vrot.slane %v4835_v0, 5 }
  0x69   :  { %v248_v24 = vrot.slane %v247_v31, 4  ;;  %v276_v25 = vrot.slane %v5528_v43, 4  ;;  %v267_v4 = vor.u32 %v266_v50, %v262_v56  ;;  %v830_v3 = vsel %vm4807_vm10, %v828_v6, %v829_v22 }
  0x6a   :  { %3843 = vmatmul.mubr.msk.bf16.gmra.mrb[4].mxu0 %vm362_vm3, %v3486_v19  ;;  %v831_v19 = vrot.slane %v829_v22, 4  ;;  %v282_v49 = vrot.slane %v5529_v28, 5  ;;  %v5531_v14 = vshrl.u32 %v4642_v51, 16  ;;  %v5532_v31 = vshll.u32 %v4647_v46, 16 }
  0x6b   :  { %3846 = vmatprep.mubr.msk.bf16.mxu0 %vm362_vm3, %v3487_v35  ;;  %v252_v35 = vrot.slane %v5537_v57, 5  ;;  %v277_v61 = vor.u32 %v276_v25, %v272_v52  ;;  %v5535_v50 = vshrl.u32 %v4647_v46, 16  ;;  %v5530_v6 = vshll.u32 %v4830_v59, 16 }
  0x6c   :  { %v292_v25 = vrot.slane %v5532_v31, 5  ;;  %v5533_v28 = vshrl.u32 %v4830_v59, 16  ;;  %v837_v31 = vrot.slane %v835_v54, 4  ;;  %v5560_v60 = vshrl.u32 %v4635_v9, 16 }
  0x6d   :  { %v257_v32 = vor.u32 %v256_v40, %v252_v35  ;;  %v278_v22 = vrot.slane %v277_v61, 4  ;;  %vm3371_vm0 = vcmask 261120  }
  0x6f   :  { %v258_v40 = vrot.slane %v257_v32, 4  ;;  %v834_v32 = vrot.slane %v832_v1, 4  ;;  %v283_v61 = vsel %vm4401_vm4, %v278_v22, %v282_v49 }
  0x72   :  { %3847 = vmatmul.mubr.msk.bf16.gmra.mrb[8].mxu0 %vm362_vm3, %v3488_v12  ;;  %v3491_v12 = vcombine.low %v821_v47, %v824_v38  ;;  %v263_v47 = vsel %vm4401_vm4, %v258_v40, %v262_v56  ;;  %v268_v38 = vrot.slane %v267_v4, 4  ;;  %v5534_v4 = vshll.u32 %v4835_v0, 16  ;;  %v72_v40 = vld [vmem:[%s5505_s0 + $0x64] sm:$0x1] }
  0x73   :  { %3850 = vmatprep.mubr.msk.bf16.mxu0 %vm362_vm3, %v3489_v55  ;;  %v253_v55 = vsel %vm4401_vm4, %v248_v24, %v252_v35  ;;  %v286_v35 = vrot.slane %v5531_v14, 4  ;;  %v5536_v56 = vshrl.u32 %v4835_v0, 16 }
  0x74   :  { %v3440_v43 = vcombine.low %v253_v55, %v263_v47  ;;  %v273_v24 = vsel %vm4401_vm4, %v268_v38, %v272_v52  ;;  %v833_v52 = vsel %vm4807_vm10, %v831_v19, %v832_v1  ;;  %v296_v38 = vrot.slane %v5535_v50, 4 }
  0x75   :  { %v3441_v55 = vcombine.low %v273_v24, %v283_v61  ;;  %v287_v47 = vor.u32 %v286_v35, %v282_v49  ;;  %v312_v19 = vrot.slane %v5534_v4, 5  ;;  %v316_v1 = vrot.slane %v5536_v56, 4 }
  0x76   :  { %3802 = vmatprep.mubr.msk.bf16.mxu1 %vm362_vm3, %v3440_v43  ;;  %v302_v43 = vrot.slane %v5530_v6, 5  ;;  %v836_v49 = vsel %vm4807_vm10, %v834_v32, %v835_v54  ;;  %v297_v24 = vor.u32 %v296_v38, %v292_v25  ;;  %v3492_v35 = vcombine.low %v827_v58, %v830_v3 }
  0x77   :  { %3803 = vmatmul.mubr.msk.bf16.vlgmr.msra.gmra.mrb[0].mxu1 %vm362_vm3, %v3441_v55  ;;  %v288_v22 = vrot.slane %v287_v47, 4  ;;  %v841_v61 = vrot.slane %v72_v40, 5  ;;  %v317_v14 = vor.u32 %v316_v1, %v312_v19  ;;  %v3493_v5 = vcombine.low %v833_v52, %v836_v49  ;;  %v5084_v49 = vld [vmem:[%s5505_s0 + $0x64] sm:$0x3] }
  0x78   :  { %v298_v4 = vrot.slane %v297_v24, 4  ;;  %v840_v56 = vrot.slane %v838_v33, 4  ;;  %v5565_v52 = vshrl.u32 %v4642_v51, 16  ;;  %v5566_v47 = vshll.u32 %v4642_v51, 16 }
  0x79   :  { %v318_v57 = vrot.slane %v317_v14, 4 }
  0x7a   :  { %3851 = vmatmul.mubr.msk.bf16.gmra.mrb[12].mxu0 %vm362_vm3, %v3490_v29  ;;  %v306_v29 = vrot.slane %v5533_v28, 4  ;;  %v293_v28 = vsel %vm4401_vm4, %v288_v22, %v292_v25  ;;  %v303_v32 = vsel %vm4401_vm4, %v298_v4, %v302_v43  ;;  %v839_v25 = vsel %vm4807_vm10, %v837_v31, %v838_v33 }
  0x7b   :  { %3854 = vmatprep.mubr.msk.bf16.mxu0 %vm362_vm3, %v3491_v12  ;;  %v320_v12 = vshll.u32 %v72_v40, 16  ;;  %v3442_v55 = vcombine.low %v293_v28, %v303_v32  ;;  %v842_v14 = vsel %vm4807_vm10, %v840_v56, %v841_v61  ;;  %v5564_v4 = vcombine.low %v4786_v41, %v4801_v20 }
  0x7c   :  { %v307_v6 = vor.u32 %v306_v29, %v302_v43  ;;  %v3494_v28 = vcombine.low %v839_v25, %v842_v14  ;;  %v1195_v40 = vrot.slane %v5565_v52, 5  ;;  %v1196_v53 = vrot.slane %v5566_v47, 6  ;;  %v4243_v52 = vld [vmem:[%s5505_s0 + $0x14] sm:$0xf] }
  0x7d   :  { %v322_v50 = vrot.slane %v320_v12, 5  ;;  %3806 = vmatprep.mubr.msk.bf16.mxu1 %vm362_vm3, %v3442_v55  ;;  %v5567_v41 = vshrl.u32 %v4830_v59, 16  ;;  %v5570_v32 = vshll.u32 %v4835_v0, 16 }
  0x7e   :  { %v308_v39 = vrot.slane %v307_v6, 4  ;;  %v1197_v12 = vor.u32 %v1196_v53, %v1195_v40  ;;  %v1477_v40 = vrot.slane %v4243_v52, 6  ;;  %v1474_v53 = vrot.slane %v4244_v13, 6 }
  0x7f   :  { %v323_v58 = vsel %vm4401_vm4, %v318_v57, %v322_v50  ;;  %v1190_v57 = vrot.slane %v5560_v60, 5  ;;  %v5563_v50 = vshll.u32 %v4647_v46, 16  ;;  %v1205_v20 = vrot.slane %v5567_v41, 5 }
  0x80   :  { %v313_v3 = vsel %vm4401_vm4, %v308_v39, %v312_v19  ;;  %v1180_v39 = vrot.slane %v254_v63, 5  ;;  %v5561_v63 = vshll.u32 %v4635_v9, 16  ;;  %v5568_v19 = vshll.u32 %v4830_v59, 16 }
  0x81   :  { %v3443_v54 = vcombine.low %v313_v3, %v323_v58  ;;  %v1201_v6 = vrot.slane %v5563_v50, 6  ;;  %v1211_v55 = vrot.slane %v5570_v32, 6  ;;  %v1216_v3 = vshrl.u32 %v5084_v49, 16  ;;  %v4242_v50 = vld [vmem:[%s5505_s0 + $0xc] sm:$0xf] }
  0x82   :  { %3855 = vmatmul.mubr.msk.bf16.gmra.mrb[16].mxu0 %vm362_vm3, %v3492_v35  ;;  %v1191_v11 = vrot.slane %v5561_v63, 6  ;;  %v1206_v1 = vrot.slane %v5568_v19, 6  ;;  %v5569_v35 = vshrl.u32 %v4835_v0, 16  ;;  %v1219_v58 = vshll.u32 %v5084_v49, 16  ;;  %v4245_v19 = vld [vmem:[%s5505_s0 + $0x18] sm:$0xf] }
  0x83   :  { %3858 = vmatprep.mubr.msk.bf16.mxu0 %vm362_vm3, %v3493_v5  ;;  %3807 = vmatmul.mubr.msk.bf16.gmra.mrb[4].mxu1 %vm362_vm3, %v3443_v54  ;;  %v5555_v5 = vshll.u32 %v4625_v37, 16  ;;  %v1202_v29 = vor.u32 %v1201_v6, %v1200_v17  ;;  %v1199_v54 = vrot.slane %v1197_v12, 4  ;;  %v1471_v6 = vrot.slane %v4242_v50, 6  ;;  %v4247_v32 = vld [vmem:[%s5505_s0 + $0x24] sm:$0xf] }
  0x84   :  { %v1192_v56 = vor.u32 %v1191_v11, %v1190_v57  ;;  %v1210_v61 = vrot.slane %v5569_v35, 5  ;;  %v1207_v14 = vor.u32 %v1206_v1, %v1205_v20  ;;  %v1476_v41 = vrot.slane %v1474_v53, 4 }
  0x85   :  { %v1204_v25 = vrot.slane %v1202_v29, 4  ;;  %v1479_v20 = vrot.slane %v1477_v40, 4  ;;  %v1480_v1 = vrot.slane %v4245_v19, 6 }
  0x86   :  { %v1194_v24 = vrot.slane %v1192_v56, 4  ;;  %v1478_v35 = vsel %vm5114_vm13, %v1476_v41, %v1477_v40  ;;  %v1511_v40 = vrot.slane %v4550_v27, 6  ;;  %v1520_v41 = vrot.slane %v4635_v9, 6 }
  0x8a   :  { %3859 = vmatmul.mubr.msk.bf16.gmra.mrb[20].mxu0 %vm362_vm3, %v3494_v28  ;;  %v5571_v28 = vcombine.low %v4848_v2, %v4861_v15  ;;  %v4240_v2 = vld [vmem:[%s5505_s0 + $0x4] sm:$0xf] }
  0x8b   :  { %3864 = vmatprep.mubr.msk.bf16.mxu0 %vm362_vm3, %v4718_v10  ;;  %v1181_v10 = vrot.slane %v5555_v5, 6  ;;  %v1212_v5 = vor.u32 %v1211_v55, %v1210_v61  ;;  %v1465_v15 = vrot.slane %v4240_v2, 6  ;;  %v1481_v61 = vsel %vm5114_vm13, %v1479_v20, %v1480_v1 }
  0x8c   :  { %v1489_v55 = vrot.slane %v4247_v32, 6  ;;  %v1532_v32 = vrot.slane %v4835_v0, 6 }
  0x8d   :  { %v1182_v8 = vor.u32 %v1181_v10, %v1180_v39  ;;  %v1198_v39 = vsel %vm4670_vm7, %v1194_v24, %v1197_v12  ;;  %v1218_v10 = vrot.slane %v1216_v3, 5  ;;  %v1214_v60 = vrot.slane %v1212_v5, 4  ;;  %v4246_v24 = vld [vmem:[%s5505_s0 + $0x1c] sm:$0xf] }
  0x8e   :  { %v1467_v11 = vrot.slane %v1465_v15, 4  ;;  %v1483_v12 = vrot.slane %v4246_v24, 6  ;;  %v1522_v24 = vrot.slane %v1520_v41, 4 }
  0x8f   :  { %v1184_v33 = vrot.slane %v1182_v8, 4  ;;  %v1183_v38 = vsel %vm4670_vm7, %v1179_v18, %v1182_v8  ;;  %v1208_v8 = vsel %vm4670_vm7, %v1204_v25, %v1207_v14  ;;  %v4241_v18 = vld [vmem:[%s5505_s0 + $0x8] sm:$0xf]  ;;  %v3537_v25 = vcombine.low %v1478_v35, %v1481_v61 }
  0x90   :  { %v1529_v61 = vrot.slane %v4830_v59, 6 }
  0x92   :  { %3865 = vmatmul.mubr.msk.bf16.vlgmr.msra.gmra.mrb[0].mxu0 %vm362_vm3, %v3509_v16  ;;  %v1185_v16 = vrot.slane %v5558_v36, 5  ;;  %v1454_v36 = vld [vmem:[%s5505_s0] sm:$0xc] }
  0x93   :  { %3889 = vmatpush3.bf16.msra.mxu0 %v1612_v23  ;;  %3868 = vmatprep.mubr.msk.bf16.mxu0 %vm362_vm3, %v3510_v26  ;;  %v1186_v26 = vrot.slane %v5559_v34, 6  ;;  %v3532_v63 = vrot.slane %v1454_v36, 10 }
  0x95   :  { %v1187_v31 = vor.u32 %v1186_v26, %v1185_v16  ;;  %v1209_v26 = vrot.slane %v1207_v14, 4  ;;  %v1482_v14 = vrot.slane %v1480_v1, 4  ;;  %v1523_v1 = vrot.slane %v4642_v51, 6 }
  0x97   :  { %v1188_v43 = vsel %vm4670_vm7, %v1184_v33, %v1187_v31  ;;  %v1468_v33 = vrot.slane %v4241_v18, 6  ;;  %v1213_v45 = vsel %vm4670_vm7, %v1209_v26, %v1212_v5  ;;  %v4249_v5 = vld [vmem:[%s5505_s0 + $0x28] sm:$0xf] }
  0x98   :  { %v3516_v22 = vcombine.low %v1183_v38, %v1188_v43 }
  0x99   :  { %v1470_v38 = vrot.slane %v1468_v33, 4 }
  0x9a   :  { %3869 = vmatmul.mubr.msk.bf16.gmra.mrb[4].mxu0 %vm362_vm3, %v5556_v44  ;;  %v1221_v44 = vrot.slane %v1219_v58, 6  ;;  %v4248_v58 = vld [vmem:[%s5505_s0 + $0x20] sm:$0xf] }
  0x9b   :  { %3872 = vmatprep.mubr.msk.bf16.mxu0 %vm362_vm3, %v5557_v62  ;;  %v1203_v62 = vsel %vm4670_vm7, %v1199_v54, %v1202_v29  ;;  %v1473_v29 = vrot.slane %v1471_v6, 4  ;;  %v1486_v54 = vrot.slane %v4248_v58, 6  ;;  %v1531_v58 = vrot.slane %v1529_v61, 4 }
  0x9c   :  { %v3518_v34 = vcombine.low %v1203_v62, %v1208_v8  ;;  %v1222_v57 = vor.u32 %v1221_v44, %v1218_v10  ;;  %v1492_v10 = vrot.slane %v4249_v5, 6  ;;  %v1484_v44 = vsel %vm5114_vm13, %v1482_v14, %v1483_v12  ;;  %v4250_v8 = vld [vmem:[%s5505_s0 + $0x2c] sm:$0xf] }
  0x9d   :  { %v1495_v2 = vrot.slane %v4250_v8, 6  ;;  %v1533_v14 = vsel %vm5114_vm13, %v1531_v58, %v1532_v32 }
  0x9e   :  { %v1223_v17 = vsel %vm4670_vm7, %v1214_v60, %v1222_v57  ;;  %v1494_v57 = vrot.slane %v1492_v10, 4 }
  0x9f   :  { %v3519_v47 = vcombine.low %v1213_v45, %v1223_v17  ;;  %v4251_v45 = vld [vmem:[%s5505_s0 + $0x3c] sm:$0xf] }
  0xa0   :  { %v1505_v17 = vrot.slane %v4251_v45, 6 }
  0xa2   :  { %3873 = vmatmul.mubr.msk.bf16.gmra.mrb[8].mxu0 %vm362_vm3, %v5564_v4  ;;  %v1466_v4 = vsel %vm5114_vm13, %v3532_v63, %v1465_v15  ;;  %v1497_v63 = vrot.slane %v1495_v2, 4  ;;  %v1507_v13 = vrot.slane %v1505_v17, 4 }
  0xa3   :  { %3876 = vmatprep.mubr.msk.bf16.mxu0 %vm362_vm3, %v4856_v42  ;;  %v1189_v42 = vrot.slane %v1187_v31, 4 }
  0xa5   :  { %v1193_v23 = vsel %vm4670_vm7, %v1189_v42, %v1192_v56  ;;  %v1469_v56 = vsel %vm5114_vm13, %v1467_v11, %v1468_v33  ;;  %v1475_v42 = vsel %vm5114_vm13, %v1473_v29, %v1474_v53  ;;  %v1498_v11 = vrot.slane %v4733_v30, 6 }
  0xa6   :  { %v3517_v16 = vcombine.low %v1193_v23, %v1198_v39  ;;  %v3535_v43 = vcombine.low %v1466_v4, %v1469_v56  ;;  %v1488_v23 = vrot.slane %v1486_v54, 4  ;;  %v1491_v39 = vrot.slane %v1489_v55, 4 }
  0xa7   :  { %v1499_v50 = vsel %vm5114_vm13, %v1497_v63, %v1498_v11  ;;  %v1514_v56 = vrot.slane %v4625_v37, 6  ;;  %v1517_v29 = vrot.slane %v4630_v7, 6  ;;  %v1526_v7 = vrot.slane %v4647_v46, 6 }
  0xa8   :  { %v1490_v15 = vsel %vm5114_vm13, %v1488_v23, %v1489_v55  ;;  %v1493_v36 = vsel %vm5114_vm13, %v1491_v39, %v1492_v10  ;;  %v1524_v46 = vsel %vm5114_vm13, %v1522_v24, %v1523_v1  ;;  %v4219_v23 = vld [vmem:[%s5508_s3 + $0x8] sm:$0xff]  }
  0xa9   :  { %v3539_v60 = vcombine.low %v1490_v15, %v1493_v36  ;;  %v1528_v35 = vrot.slane %v1526_v7, 4  ;;  %3914 = vmatprep.subr.bf16.mxu1 %v4219_v23  ;;  %v5258_v15 = vld [vmem:[%s5507_s2] ss:$0 sm:$0xff] }
  0xaa   :  { %3877 = vmatmul.mubr.msk.bf16.gmra.mrb[12].mxu0 %vm362_vm3, %v5571_v28  ;;  %v1485_v28 = vrot.slane %v1483_v12, 4  ;;  %v1525_v12 = vrot.slane %v1523_v1, 4  ;;  %3915 = vmatpush3.bf16.msra.mxu1 %v4219_v23 }
  0xab   :  { %3880 = vmatprep.mubr.msk.bf16.mxu0 %vm362_vm3, %v3516_v22  ;;  %v1472_v22 = vsel %vm5114_vm13, %v1470_v38, %v1471_v6  ;;  %v1508_v6 = vrot.slane %v4542_v21, 6  ;;  %v1513_v38 = vrot.slane %v1511_v40, 4  ;;  %v1530_v55 = vsel %vm5114_vm13, %v1528_v35, %v1529_v61 }
  0xac   :  { %v3536_v3 = vcombine.low %v1472_v22, %v1475_v42  ;;  %v1487_v62 = vsel %vm5114_vm13, %v1485_v28, %v1486_v54  ;;  %v1519_v42 = vrot.slane %v1517_v29, 4  ;;  %v1527_v51 = vsel %vm5114_vm13, %v1525_v12, %v1526_v7 }
  0xad   :  { %v3538_v26 = vcombine.low %v1484_v44, %v1487_v62  ;;  %v1510_v53 = vrot.slane %v1508_v6, 4  ;;  %v1509_v21 = vsel %vm5114_vm13, %v1507_v13, %v1508_v6  ;;  %v1515_v27 = vsel %vm5114_vm13, %v1513_v38, %v1514_v56 }
  0xae   :  { %v1521_v9 = vsel %vm5114_vm13, %v1519_v42, %v1520_v41  ;;  %v3545_v59 = vcombine.low %v1527_v51, %v1530_v55  ;;  %v1534_v54 = vrot.slane %v1532_v32, 4 }
  0xaf   :  { %v1512_v37 = vsel %vm5114_vm13, %v1510_v53, %v1511_v40 }
  0xb0   :  { %v3542_v19 = vcombine.low %v1509_v21, %v1512_v37 }
  0xb2   :  { %3881 = vmatmul.mubr.msk.bf16.gmra.mrb[16].mxu0 %vm362_vm3, %v3517_v16  ;;  %v1502_v16 = vrot.slane %v4518_v48, 6  ;;  %v1496_v48 = vsel %vm5114_vm13, %v1494_v57, %v1495_v2 }
  0xb3   :  { %3884 = vmatprep.mubr.msk.bf16.mxu0 %vm362_vm3, %v3518_v34  ;;  %v1455_v34 = vld [vmem:[%s5505_s0 + $0x34] sm:$0xc]  ;;  %v3540_v52 = vcombine.low %v1496_v48, %v1499_v50 }
  0xb4   :  { %v3533_v18 = vrot.slane %v1455_v34, 10  ;;  %v1504_v33 = vrot.slane %v1502_v16, 4 }
  0xb6   :  { %v1503_v30 = vsel %vm5114_vm13, %v3533_v18, %v1502_v16  ;;  %v1506_v4 = vsel %vm5114_vm13, %v1504_v33, %v1505_v17 }
  0xba   :  { %3885 = vmatmul.mubr.msk.bf16.gmra.mrb[20].mxu0 %vm362_vm3, %v3519_v47  ;;  %v3541_v47 = vcombine.low %v1503_v30, %v1506_v4 }
  0xbb   :  { %3890 = vmatprep.mubr.msk.bf16.mxu0 %vm362_vm3, %v3535_v43  ;;  %v1516_v43 = vrot.slane %v1514_v56, 4 }
  0xbd   :  { %v1518_v20 = vsel %vm5114_vm13, %v1516_v43, %v1517_v29 }
  0xbe   :  { %v3543_v22 = vcombine.low %v1515_v27, %v1518_v20 }
  0xc2   :  { %3891 = vmatmul.mubr.msk.bf16.vlgmr.msra.gmra.mrb[0].mxu0 %vm362_vm3, %v3536_v3  ;;  %v3544_v3 = vcombine.low %v1521_v9, %v1524_v46 }
  0xc3   :  { %3894 = vmatprep.mubr.msk.bf16.mxu0 %vm362_vm3, %v3537_v25  ;;  %v1535_v25 = vrot.slane %v5084_v49, 6  ;;  %v5236_v49 = vld [vmem:[%s5508_s3] sm:$0xff]  }
  0xc4   :  { %3924 = vmatprep.subr.bf16.mxu1 %v5236_v49 }
  0xc5   :  { %v1536_v0 = vsel %vm5114_vm13, %v1534_v54, %v1535_v25 }
  0xc6   :  { %v3546_v28 = vcombine.low %v1533_v14, %v1536_v0 }
  0xca   :  { %3895 = vmatmul.mubr.msk.bf16.gmra.mrb[4].mxu0 %vm362_vm3, %v3538_v26 }
  0xcb   :  { %3898 = vmatprep.mubr.msk.bf16.mxu0 %vm362_vm3, %v3539_v60 }
  0xd2   :  { %3899 = vmatmul.mubr.msk.bf16.gmra.mrb[8].mxu0 %vm362_vm3, %v3540_v52 }
  0xd3   :  { %3902 = vmatprep.mubr.msk.bf16.mxu0 %vm362_vm3, %v3541_v47 }
  0xda   :  { %3903 = vmatmul.mubr.msk.bf16.gmra.mrb[12].mxu0 %vm362_vm3, %v3542_v19 }
  0xdb   :  { %3906 = vmatprep.mubr.msk.bf16.mxu0 %vm362_vm3, %v3543_v22 }
  0xe2   :  { %3907 = vmatmul.mubr.msk.bf16.gmra.mrb[16].mxu0 %vm362_vm3, %v3544_v3 }
  0xe3   :  { %3910 = vmatprep.mubr.msk.bf16.mxu0 %vm362_vm3, %v3545_v59 }
  0xea   :  { %3911 = vmatmul.mubr.msk.bf16.gmra.mrb[20].mxu0 %vm362_vm3, %v3546_v28 }
 0x14a   :  { %v5239_v39 = vpop.f32.mrb[0].mxu1 }
 0x14b   :  { %v5241_v31 = vpop.f32.mrb[1].mxu1 }
 0x14c   :  { %v5243_v5 = vpop.f32.mrb[2].mxu1 }
 0x14d   :  { %v5245_v10 = vpop.f32.mrb[3].mxu1 }
 0x156   :  { %v5247_v44 = vpop.f32.mrb[4].mxu1 }
 0x157   :  { %v5249_v62 = vpop.f32.mrb[5].mxu1 }
 0x158   :  { %v5251_v8 = vpop.f32.mrb[6].mxu1 }
 0x159   :  { %v5253_v2 = vpop.f32.mrb[7].mxu1 }
 0x195   :  { %v3892_v36 = vpop.f32.mrb[0].mxu0 }
 0x196   :  { %v1776_v16 = vadd.f32 %v3892_v36, %v5258_v15  ;;  %v1648_v34 = vpop.f32.mrb[1].mxu0 }
 0x197   :  { %v1774_v26 = vadd.f32 %v5258_v15, %v1648_v34  ;;  %v3893_v60 = vpop.f32.mrb[2].mxu0 }
 0x198   :  { %v1800_v57 = vmax.f32 %v1776_v16, 0.0  ;;  %v1777_v63 = vadd.f32 %v3893_v60, %v5258_v15  ;;  %v1651_v11 = vpop.f32.mrb[3].mxu0  ;;  %v4221_v16 = vld [vmem:[%s5508_s3 + $0x10] sm:$0xff]  }
 0x199   :  { %v1798_v18 = vmax.f32 %v1774_v26, 0.0  ;;  %v1775_v33 = vadd.f32 %v5258_v15, %v1651_v11 }
 0x19a   :  { %1825 = vst.msk [vmem:[#allocation2 + $0x10] sm:$0xff] %vm1822_vm14, %v1800_v57  ;;  %v1801_v45 = vmax.f32 %v1777_v63, 0.0 }
 0x19b   :  { %1823 = vst.msk [vmem:[#allocation2] sm:$0xff] %vm1822_vm14, %v1798_v18  ;;  %v1799_v17 = vmax.f32 %v1775_v33, 0.0 }
 0x19c   :  { %1826 = vst.msk [vmem:[#allocation2 + $0x18] sm:$0xff] %vm1822_vm14, %v1801_v45 }
 0x19d   :  { %1824 = vst.msk [vmem:[#allocation2 + $0x8] sm:$0xff] %vm1822_vm14, %v1799_v17  ;;  %v3896_v48 = vpop.f32.mrb[4].mxu0 }
 0x19e   :  { %v1780_v50 = vadd.f32 %v3896_v48, %v5258_v15  ;;  %v1664_v6 = vpop.f32.mrb[5].mxu0 }
 0x19f   :  { %v1778_v30 = vadd.f32 %v5258_v15, %v1664_v6  ;;  %v3897_v4 = vpop.f32.mrb[6].mxu0 }
 0x1a0   :  { %v1804_v56 = vmax.f32 %v1780_v50, 0.0  ;;  %v1781_v52 = vadd.f32 %v3897_v4, %v5258_v15  ;;  %v1667_v40 = vpop.f32.mrb[7].mxu0 }
 0x1a1   :  { %v1802_v47 = vmax.f32 %v1778_v30, 0.0  ;;  %v1779_v13 = vadd.f32 %v5258_v15, %v1667_v40 }
 0x1a2   :  { %1829 = vst.msk [vmem:[#allocation2 + $0x30] sm:$0xff] %vm1822_vm14, %v1804_v56  ;;  %v1805_v53 = vmax.f32 %v1781_v52, 0.0 }
 0x1a3   :  { %1827 = vst.msk [vmem:[#allocation2 + $0x20] sm:$0xff] %vm1822_vm14, %v1802_v47  ;;  %v1803_v38 = vmax.f32 %v1779_v13, 0.0 }
 0x1a4   :  { %1830 = vst.msk [vmem:[#allocation2 + $0x38] sm:$0xff] %vm1822_vm14, %v1805_v53  ;;  %v1869_v24 = vld [vmem:[#allocation2 + $0x1] ss:$3 sm:$0xff] }
 0x1a5   :  { %1828 = vst.msk [vmem:[#allocation2 + $0x28] sm:$0xff] %vm1822_vm14, %v1803_v38  ;;  %v3900_v43 = vpop.f32.mrb[8].mxu0 }
 0x1a6   :  { %v1784_v29 = vadd.f32 %v3900_v43, %v5258_v15  ;;  %v1680_v21 = vpop.f32.mrb[9].mxu0 }
 0x1a7   :  { %v1782_v37 = vadd.f32 %v5258_v15, %v1680_v21  ;;  %v3901_v41 = vpop.f32.mrb[10].mxu0 }
 0x1a8   :  { %v1808_v27 = vmax.f32 %v1784_v29, 0.0  ;;  %v1785_v20 = vadd.f32 %v3901_v41, %v5258_v15  ;;  %v1683_v7 = vpop.f32.mrb[11].mxu0 }
 0x1a9   :  { %v1806_v19 = vmax.f32 %v1782_v37, 0.0  ;;  %v1783_v1 = vadd.f32 %v5258_v15, %v1683_v7 }
 0x1aa   :  { %1833 = vst.msk [vmem:[#allocation2 + $0x50] sm:$0xff] %vm1822_vm14, %v1808_v27  ;;  %v1809_v22 = vmax.f32 %v1785_v20, 0.0 }
 0x1ab   :  { %1831 = vst.msk [vmem:[#allocation2 + $0x40] sm:$0xff] %vm1822_vm14, %v1806_v19  ;;  %v1807_v42 = vmax.f32 %v1783_v1, 0.0 }
 0x1ac   :  { %1834 = vst.msk [vmem:[#allocation2 + $0x58] sm:$0xff] %vm1822_vm14, %v1809_v22  ;;  %v1871_v12 = vld [vmem:[#allocation2 + $0x19] ss:$3 sm:$0xff] }
 0x1ad   :  { %1832 = vst.msk [vmem:[#allocation2 + $0x48] sm:$0xff] %vm1822_vm14, %v1807_v42  ;;  %v3904_v35 = vpop.f32.mrb[12].mxu0  ;;  %v1887_v61 = vpack.c.bf16 %v1871_v12, %v1869_v24 }
 0x1ae   :  { %v1788_v9 = vadd.f32 %v3904_v35, %v5258_v15  ;;  %v1696_v46 = vpop.f32.mrb[13].mxu0 }
 0x1af   :  { %v1786_v32 = vadd.f32 %v5258_v15, %v1696_v46  ;;  %v3905_v51 = vpop.f32.mrb[14].mxu0  ;;  %3916 = vmatprep.mubr.msk.bf16.mxu1 %vm1822_vm14, %v1887_v61  ;;  %v2060_v61 = vld [vmem:[#allocation2 + $0x1a] ss:$3 sm:$0xff] }
 0x1b0   :  { %v1812_v55 = vmax.f32 %v1788_v9, 0.0  ;;  %v1789_v3 = vadd.f32 %v3905_v51, %v5258_v15  ;;  %v1699_v59 = vpop.f32.mrb[15].mxu0 }
 0x1b1   :  { %v1810_v58 = vmax.f32 %v1786_v32, 0.0  ;;  %v1787_v54 = vadd.f32 %v5258_v15, %v1699_v59  ;;  %v2058_v32 = vld [vmem:[#allocation2 + $0x2] ss:$3 sm:$0xff] }
 0x1b2   :  { %1837 = vst.msk [vmem:[#allocation2 + $0x70] sm:$0xff] %vm1822_vm14, %v1812_v55  ;;  %v1813_v25 = vmax.f32 %v1789_v3, 0.0  ;;  %v1873_v0 = vld [vmem:[#allocation2 + $0x31] ss:$3 sm:$0xff]  ;;  %v1851_v22 = vld [vmem:[#allocation2 + $0x30] ss:$3 sm:$0xff]  ;;  %v2076_v51 = vpack.c.bf16 %v2060_v61, %v2058_v32 }
 0x1b3   :  { %1835 = vst.msk [vmem:[#allocation2 + $0x60] sm:$0xff] %vm1822_vm14, %v1810_v58  ;;  %v1811_v14 = vmax.f32 %v1787_v54, 0.0  ;;  %v2062_v59 = vld [vmem:[#allocation2 + $0x32] ss:$3 sm:$0xff] }
 0x1b4   :  { %1838 = vst.msk [vmem:[#allocation2 + $0x78] sm:$0xff] %vm1822_vm14, %v1813_v25  ;;  %v1875_v28 = vld [vmem:[#allocation2 + $0x49] ss:$3 sm:$0xff]  ;;  %v1853_v19 = vld [vmem:[#allocation2 + $0x48] ss:$3 sm:$0xff] }
 0x1b5   :  { %1836 = vst.msk [vmem:[#allocation2 + $0x68] sm:$0xff] %vm1822_vm14, %v1811_v14  ;;  %v3908_v23 = vpop.f32.mrb[16].mxu0  ;;  %v1888_v36 = vpack.c.bf16 %v1875_v28, %v1873_v0  ;;  %v1865_v42 = vpack.c.bf16 %v1853_v19, %v1851_v22  ;;  %v2064_v55 = vld [vmem:[#allocation2 + $0x4a] ss:$3 sm:$0xff] }
 0x1b6   :  { %v4062_v34 = vadd.f32 %v3908_v23, %v5239_v39  ;;  %v1712_v26 = vpop.f32.mrb[17].mxu0  ;;  %v2077_v58 = vpack.c.bf16 %v2064_v55, %v2062_v59  ;;  %v4222_v23 = vld [vmem:[%s5510_s5 + $0x8] sm:$0xff]  }
 0x1b7   :  { %v4063_v60 = vadd.f32 %v1712_v26, %v5241_v31  ;;  %v3909_v57 = vpop.f32.mrb[18].mxu0  ;;  %3917 = vmatmul.mubr.msk.bf16.vlgmr.msra.gmra.mrb[8].mxu1 %vm1822_vm14, %v1888_v36  ;;  %v4276_v36 = vmov 0.0  }
 0x1b8   :  { %v1792_v63 = vadd.f32 %v4062_v34, %v5258_v15  ;;  %v4064_v11 = vadd.f32 %v3909_v57, %v5243_v5  ;;  %v1715_v18 = vpop.f32.mrb[19].mxu0  ;;  %3925 = vmatpush3.bf16.msra.mxu1 %v5236_v49  ;;  %2202 = vst.msk [vmem:[#allocation3 + $0x40] sm:$0xff] %vm1822_vm14, %v4276_v36  ;;  %2535 = vst.msk [vmem:[#allocation4 + $0x20] sm:$0xff] %vm1822_vm14, %v4276_v36  ;;  %v3579_v34 = vld [vmem:[%s5509_s4] ss:$0 sm:$0xff] }
 0x1b9   :  { %v1790_v33 = vadd.f32 %v4063_v60, %v5258_v15  ;;  %v4065_v45 = vadd.f32 %v1715_v18, %v5245_v10  ;;  %3934 = vmatprep.subr.bf16.mxu1 %v4221_v16  ;;  %2536 = vst.msk [vmem:[#allocation4 + $0x28] sm:$0xff] %vm1822_vm14, %v4276_v36  ;;  %2537 = vst.msk [vmem:[#allocation4 + $0x50] sm:$0xff] %vm1822_vm14, %v4276_v36 }
 0x1ba   :  { %v1816_v17 = vmax.f32 %v1792_v63, 0.0  ;;  %v1793_v39 = vadd.f32 %v4064_v11, %v5258_v15  ;;  %2538 = vst.msk [vmem:[#allocation4 + $0x58] sm:$0xff] %vm1822_vm14, %v4276_v36 }
 0x1bb   :  { %v1814_v48 = vmax.f32 %v1790_v33, 0.0  ;;  %v1791_v31 = vadd.f32 %v4065_v45, %v5258_v15 }
 0x1bc   :  { %1841 = vst.msk [vmem:[#allocation2 + $0x90] sm:$0xff] %vm1822_vm14, %v1816_v17  ;;  %v1817_v50 = vmax.f32 %v1793_v39, 0.0  ;;  %v1855_v24 = vld [vmem:[#allocation2 + $0x60] ss:$3 sm:$0xff]  ;;  %v2066_v54 = vld [vmem:[#allocation2 + $0x62] ss:$3 sm:$0xff] }
 0x1bd   :  { %1839 = vst.msk [vmem:[#allocation2 + $0x80] sm:$0xff] %vm1822_vm14, %v1814_v48  ;;  %v1815_v5 = vmax.f32 %v1791_v31, 0.0  ;;  %v3912_v6 = vpop.f32.mrb[20].mxu0 }
 0x1be   :  { %1842 = vst.msk [vmem:[#allocation2 + $0x98] sm:$0xff] %vm1822_vm14, %v1817_v50  ;;  %v4066_v49 = vadd.f32 %v3912_v6, %v5247_v44  ;;  %v1728_v30 = vpop.f32.mrb[21].mxu0 }
 0x1bf   :  { %1840 = vst.msk [vmem:[#allocation2 + $0x88] sm:$0xff] %vm1822_vm14, %v1815_v5  ;;  %v4067_v10 = vadd.f32 %v1728_v30, %v5249_v62  ;;  %v3913_v4 = vpop.f32.mrb[22].mxu0 }
 0x1c0   :  { %v1796_v56 = vadd.f32 %v4066_v49, %v5258_v15  ;;  %v4068_v52 = vadd.f32 %v3913_v4, %v5251_v8  ;;  %v1731_v40 = vpop.f32.mrb[23].mxu0  ;;  %v1877_v8 = vld [vmem:[#allocation2 + $0x61] ss:$3 sm:$0xff] }
 0x1c1   :  { %v1794_v47 = vadd.f32 %v4067_v10, %v5258_v15  ;;  %v4069_v13 = vadd.f32 %v1731_v40, %v5253_v2  ;;  %v1849_v2 = vld [vmem:[#allocation2 + $0x18] ss:$3 sm:$0xff] }
 0x1c2   :  { %v1820_v53 = vmax.f32 %v1796_v56, 0.0  ;;  %v1797_v38 = vadd.f32 %v4068_v52, %v5258_v15 }
 0x1c3   :  { %v1818_v43 = vmax.f32 %v1794_v47, 0.0  ;;  %v1795_v44 = vadd.f32 %v4069_v13, %v5258_v15  ;;  %v1847_v15 = vld [vmem:[#allocation2] ss:$3 sm:$0xff] }
 0x1c4   :  { %1845 = vst.msk [vmem:[#allocation2 + $0xb0] sm:$0xff] %vm1822_vm14, %v1820_v53  ;;  %v1821_v29 = vmax.f32 %v1797_v38, 0.0  ;;  %v1864_v7 = vpack.c.bf16 %v1849_v2, %v1847_v15 }
 0x1c5   :  { %1843 = vst.msk [vmem:[#allocation2 + $0xa0] sm:$0xff] %vm1822_vm14, %v1818_v43  ;;  %v1819_v62 = vmax.f32 %v1795_v44, 0.0 }
 0x1c6   :  { %1846 = vst.msk [vmem:[#allocation2 + $0xb8] sm:$0xff] %vm1822_vm14, %v1821_v29  ;;  %v1879_v21 = vld [vmem:[#allocation2 + $0x79] ss:$3 sm:$0xff]  ;;  %v1857_v1 = vld [vmem:[#allocation2 + $0x78] ss:$3 sm:$0xff] }
 0x1c7   :  { %1844 = vst.msk [vmem:[#allocation2 + $0xa8] sm:$0xff] %vm1822_vm14, %v1819_v62  ;;  %v1889_v37 = vpack.c.bf16 %v1879_v21, %v1877_v8  ;;  %v1866_v12 = vpack.c.bf16 %v1857_v1, %v1855_v24  ;;  %v2068_v3 = vld [vmem:[#allocation2 + $0x7a] ss:$3 sm:$0xff]  ;;  %v4224_v8 = vld [vmem:[%s5510_s5 + $0x10] sm:$0xff]  }
 0x1c8   :  { %v2078_v25 = vpack.c.bf16 %v2068_v3, %v2066_v54 }
 0x1c9   :  { %3920 = vmatprep.mubr.msk.bf16.mxu1 %vm1822_vm14, %v1889_v37 }
 0x1cc   :  { %v1881_v41 = vld [vmem:[#allocation2 + $0x91] ss:$3 sm:$0xff]  ;;  %v1859_v9 = vld [vmem:[#allocation2 + $0x90] ss:$3 sm:$0xff]  ;;  %v2070_v0 = vld [vmem:[#allocation2 + $0x92] ss:$3 sm:$0xff] }
 0x1ce   :  { %v1883_v27 = vld [vmem:[#allocation2 + $0xa9] ss:$3 sm:$0xff]  ;;  %v1861_v35 = vld [vmem:[#allocation2 + $0xa8] ss:$3 sm:$0xff]  ;;  %v2072_v14 = vld [vmem:[#allocation2 + $0xaa] ss:$3 sm:$0xff] }
 0x1cf   :  { %v1890_v20 = vpack.c.bf16 %v1883_v27, %v1881_v41  ;;  %v1867_v46 = vpack.c.bf16 %v1861_v35, %v1859_v9  ;;  %v2079_v28 = vpack.c.bf16 %v2072_v14, %v2070_v0 }
 0x1d1   :  { %3921 = vmatmul.mubr.msk.bf16.gmra.mrb[12].mxu1 %vm1822_vm14, %v1890_v20 }
 0x1d2   :  { %3926 = vmatprep.mubr.msk.bf16.mxu1 %vm1822_vm14, %v1864_v7 }
 0x1d9   :  { %3927 = vmatmul.mubr.msk.bf16.vlgmr.msra.gmra.mrb[8].mxu1 %vm1822_vm14, %v1865_v42 }
 0x1da   :  { %3935 = vmatpush3.bf16.msra.mxu1 %v4221_v16  ;;  %3930 = vmatprep.mubr.msk.bf16.mxu1 %vm1822_vm14, %v1866_v12  ;;  %v4223_v16 = vld [vmem:[%s5510_s5] sm:$0xff]  }
 0x1db   :  { %3944 = vmatprep.subr.bf16.mxu1 %v4222_v23 }
 0x1e1   :  { %3931 = vmatmul.mubr.msk.bf16.gmra.mrb[12].mxu1 %vm1822_vm14, %v1867_v46 }
 0x1e2   :  { %3936 = vmatprep.mubr.msk.bf16.mxu1 %vm1822_vm14, %v2076_v51 }
 0x1e9   :  { %3937 = vmatmul.mubr.msk.bf16.vlgmr.msra.gmra.mrb[8].mxu1 %vm1822_vm14, %v2077_v58 }
 0x1ea   :  { %3940 = vmatprep.mubr.msk.bf16.mxu1 %vm1822_vm14, %v2078_v25  ;;  %3945 = vmatpush3.bf16.msra.mxu1 %v4222_v23 }
 0x1eb   :  { %3954 = vmatprep.subr.bf16.mxu1 %v4223_v16 }
 0x1f1   :  { %3941 = vmatmul.mubr.msk.bf16.gmra.mrb[12].mxu1 %vm1822_vm14, %v2079_v28 }
 0x2bc   :  { %v3938_v26 = vpop.f32.mrb[8].mxu1 }
 0x2bd   :  { %v2180_v60 = vadd.f32 %v3938_v26, %v3579_v34  ;;  %v2132_v57 = vpop.f32.mrb[9].mxu1  ;;  %v3599_v26 = vld [vmem:[%s5511_s6] ss:$0 sm:$0xff] }
 0x2be   :  { %v2178_v63 = vadd.f32 %v3579_v34, %v2132_v57  ;;  %v3939_v11 = vpop.f32.mrb[10].mxu1 }
 0x2bf   :  { %v2188_v18 = vmax.f32 %v2180_v60, 0.0  ;;  %v2181_v33 = vadd.f32 %v3939_v11, %v3579_v34  ;;  %v2135_v45 = vpop.f32.mrb[11].mxu1 }
 0x2c0   :  { %v2186_v17 = vmax.f32 %v2178_v63, 0.0  ;;  %v2179_v39 = vadd.f32 %v3579_v34, %v2135_v45 }
 0x2c1   :  { %2196 = vst.msk [vmem:[#allocation3 + $0x10] sm:$0xff] %vm1822_vm14, %v2188_v18  ;;  %v2189_v48 = vmax.f32 %v2181_v33, 0.0 }
 0x2c2   :  { %2194 = vst.msk [vmem:[#allocation3] sm:$0xff] %vm1822_vm14, %v2186_v17  ;;  %v2187_v31 = vmax.f32 %v2179_v39, 0.0 }
 0x2c3   :  { %2197 = vst.msk [vmem:[#allocation3 + $0x18] sm:$0xff] %vm1822_vm14, %v2189_v48 }
 0x2c4   :  { %2195 = vst.msk [vmem:[#allocation3 + $0x8] sm:$0xff] %vm1822_vm14, %v2187_v31  ;;  %v3942_v50 = vpop.f32.mrb[12].mxu1 }
 0x2c5   :  { %v2184_v5 = vadd.f32 %v3942_v50, %v3579_v34  ;;  %v2148_v6 = vpop.f32.mrb[13].mxu1 }
 0x2c6   :  { %v2182_v49 = vadd.f32 %v3579_v34, %v2148_v6  ;;  %v3943_v30 = vpop.f32.mrb[14].mxu1 }
 0x2c7   :  { %v2192_v10 = vmax.f32 %v2184_v5, 0.0  ;;  %v2185_v4 = vadd.f32 %v3943_v30, %v3579_v34  ;;  %v2151_v56 = vpop.f32.mrb[15].mxu1 }
 0x2c8   :  { %v2190_v52 = vmax.f32 %v2182_v49, 0.0  ;;  %v2183_v40 = vadd.f32 %v3579_v34, %v2151_v56  ;;  %v2205_v42 = vld [vmem:[#allocation3 + $0x10] sm:$0xff]  ;;  %v4226_v34 = vld [vmem:[%s5512_s7] sm:$0xff]  }
 0x2c9   :  { %2200 = vst.msk [vmem:[#allocation3 + $0x30] sm:$0xff] %vm1822_vm14, %v2192_v10  ;;  %v2193_v47 = vmax.f32 %v2185_v4, 0.0  ;;  %v2203_v7 = vld [vmem:[#allocation3] sm:$0xff] }
 0x2ca   :  { %2198 = vst.msk [vmem:[#allocation3 + $0x20] sm:$0xff] %vm1822_vm14, %v2190_v52  ;;  %v2191_v13 = vmax.f32 %v2183_v40, 0.0  ;;  %v2219_v44 = vld [vmem:[#allocation3 + $0x11] sm:$0xff] }
 0x2cb   :  { %2201 = vst.msk [vmem:[#allocation3 + $0x38] sm:$0xff] %vm1822_vm14, %v2193_v47  ;;  %v2217_v53 = vld [vmem:[#allocation3 + $0x1] sm:$0xff]  ;;  %v2218_v38 = vld [vmem:[#allocation3 + $0x9] sm:$0xff]  ;;  %v2206_v1 = vld [vmem:[#allocation3 + $0x18] sm:$0xff] }
 0x2cc   :  { %2199 = vst.msk [vmem:[#allocation3 + $0x28] sm:$0xff] %vm1822_vm14, %v2191_v13  ;;  %v2228_v43 = vpack.c.bf16 %v2218_v38, %v2217_v53  ;;  %v2204_v20 = vld [vmem:[#allocation3 + $0x8] sm:$0xff]  ;;  %v2214_v24 = vpack.c.bf16 %v2206_v1, %v2205_v42  ;;  %v2400_v54 = vld [vmem:[#allocation3 + $0x12] sm:$0xff] }
 0x2cd   :  { %v2213_v19 = vpack.c.bf16 %v2204_v20, %v2203_v7  ;;  %v2398_v9 = vld [vmem:[#allocation3 + $0x2] sm:$0xff]  ;;  %v2399_v46 = vld [vmem:[#allocation3 + $0xa] sm:$0xff] }
 0x2ce   :  { %3946 = vmatprep.mubr.msk.bf16.mxu1 %vm1822_vm14, %v2228_v43  ;;  %v2409_v55 = vpack.c.bf16 %v2399_v46, %v2398_v9 }
 0x2d0   :  { %v2209_v32 = vld [vmem:[#allocation3 + $0x30] sm:$0xff] }
 0x2d1   :  { %v2220_v29 = vld [vmem:[#allocation3 + $0x19] sm:$0xff] }
 0x2d2   :  { %v2229_v62 = vpack.c.bf16 %v2220_v29, %v2219_v44  ;;  %v2223_v41 = vld [vmem:[#allocation3 + $0x31] sm:$0xff]  ;;  %v2224_v27 = vld [vmem:[#allocation3 + $0x39] sm:$0xff] }
 0x2d3   :  { %v2221_v21 = vld [vmem:[#allocation3 + $0x21] sm:$0xff]  ;;  %v2222_v37 = vld [vmem:[#allocation3 + $0x29] sm:$0xff]  ;;  %v2231_v15 = vpack.c.bf16 %v2224_v27, %v2223_v41  ;;  %v2210_v61 = vld [vmem:[#allocation3 + $0x38] sm:$0xff] }
 0x2d4   :  { %3947 = vmatmul.mubr.msk.bf16.vlgmr.msra.gmra.mrb[16].mxu1 %vm1822_vm14, %v2229_v62  ;;  %v2230_v2 = vpack.c.bf16 %v2222_v37, %v2221_v21  ;;  %v2208_v22 = vld [vmem:[#allocation3 + $0x28] sm:$0xff]  ;;  %v2207_v12 = vld [vmem:[#allocation3 + $0x20] sm:$0xff]  ;;  %v2216_v51 = vpack.c.bf16 %v2210_v61, %v2209_v32  ;;  %v2404_v0 = vld [vmem:[#allocation3 + $0x32] sm:$0xff] }
 0x2d5   :  { %3955 = vmatpush3.bf16.msra.mxu1 %v4223_v16  ;;  %v2215_v35 = vpack.c.bf16 %v2208_v22, %v2207_v12  ;;  %v2401_v3 = vld [vmem:[#allocation3 + $0x1a] sm:$0xff]  ;;  %v2402_v59 = vld [vmem:[#allocation3 + $0x22] sm:$0xff]  ;;  %v2403_v58 = vld [vmem:[#allocation3 + $0x2a] sm:$0xff] }
 0x2d6   :  { %3950 = vmatprep.mubr.msk.bf16.mxu1 %vm1822_vm14, %v2230_v2  ;;  %3964 = vmatprep.subr.bf16.mxu1 %v4224_v8  ;;  %v2410_v25 = vpack.c.bf16 %v2401_v3, %v2400_v54  ;;  %v2411_v14 = vpack.c.bf16 %v2403_v58, %v2402_v59  ;;  %v2405_v28 = vld [vmem:[#allocation3 + $0x3a] sm:$0xff]  ;;  %v4225_v16 = vld [vmem:[%s5512_s7 + $0x8] sm:$0xff]   ;;  %v4227_v2 = vld [vmem:[%s5512_s7 + $0x10] sm:$0xff]  }
 0x2d7   :  { %v2412_v23 = vpack.c.bf16 %v2405_v28, %v2404_v0  ;;  %v4228_v12 = vld [vmem:[%s5514_s9 + $0x8] sm:$0xff]   ;;  %v4229_v28 = vld [vmem:[%s5514_s9] sm:$0xff]  }
 0x2dc   :  { %3951 = vmatmul.mubr.msk.bf16.gmra.mrb[20].mxu1 %vm1822_vm14, %v2231_v15 }
 0x2dd   :  { %3956 = vmatprep.mubr.msk.bf16.mxu1 %vm1822_vm14, %v2213_v19 }
 0x2e4   :  { %3957 = vmatmul.mubr.msk.bf16.vlgmr.msra.gmra.mrb[16].mxu1 %vm1822_vm14, %v2214_v24 }
 0x2e5   :  { %3965 = vmatpush3.bf16.msra.mxu1 %v4224_v8  ;;  %3960 = vmatprep.mubr.msk.bf16.mxu1 %vm1822_vm14, %v2215_v35  ;;  %v3613_v35 = vld [vmem:[%s5513_s8] ss:$0 sm:$0xff] }
 0x2e6   :  { %3974 = vmatprep.subr.bf16.mxu1 %v4225_v16 }
 0x2ec   :  { %3961 = vmatmul.mubr.msk.bf16.gmra.mrb[20].mxu1 %vm1822_vm14, %v2216_v51 }
 0x2ed   :  { %3966 = vmatprep.mubr.msk.bf16.mxu1 %vm1822_vm14, %v2409_v55 }
 0x2f4   :  { %3967 = vmatmul.mubr.msk.bf16.vlgmr.msra.gmra.mrb[16].mxu1 %vm1822_vm14, %v2410_v25 }
 0x2f5   :  { %3970 = vmatprep.mubr.msk.bf16.mxu1 %vm1822_vm14, %v2411_v14  ;;  %3975 = vmatpush3.bf16.msra.mxu1 %v4225_v16 }
 0x2f6   :  { %3980 = vmatprep.subr.bf16.mxu1 %v4226_v34 }
 0x2fc   :  { %3971 = vmatmul.mubr.msk.bf16.gmra.mrb[20].mxu1 %vm1822_vm14, %v2412_v23 }
 0x3c7   :  { %v3968_v60 = vpop.f32.mrb[16].mxu1 }
 0x3c8   :  { %v2513_v57 = vadd.f32 %v3968_v60, %v3599_v26  ;;  %v2465_v63 = vpop.f32.mrb[17].mxu1 }
 0x3c9   :  { %v2511_v11 = vadd.f32 %v3599_v26, %v2465_v63  ;;  %v3969_v18 = vpop.f32.mrb[18].mxu1 }
 0x3ca   :  { %v2521_v33 = vmax.f32 %v2513_v57, 0.0  ;;  %v2514_v45 = vadd.f32 %v3969_v18, %v3599_v26  ;;  %v2468_v17 = vpop.f32.mrb[19].mxu1  ;;  %v4231_v57 = vld [vmem:[%s5514_s9 + $0x18] sm:$0xff]   ;;  %v4232_v18 = vld [vmem:[%s5514_s9 + $0x20] sm:$0xff]  }
 0x3cb   :  { %v2519_v39 = vmax.f32 %v2511_v11, 0.0  ;;  %v2512_v48 = vadd.f32 %v3599_v26, %v2468_v17  ;;  %v4233_v17 = vld [vmem:[%s5514_s9 + $0x28] sm:$0xff]  }
 0x3cc   :  { %2529 = vst.msk [vmem:[#allocation4 + $0x10] sm:$0xff] %vm1822_vm14, %v2521_v33  ;;  %v2522_v31 = vmax.f32 %v2514_v45, 0.0 }
 0x3cd   :  { %2527 = vst.msk [vmem:[#allocation4] sm:$0xff] %vm1822_vm14, %v2519_v39  ;;  %v2520_v50 = vmax.f32 %v2512_v48, 0.0 }
 0x3ce   :  { %2530 = vst.msk [vmem:[#allocation4 + $0x18] sm:$0xff] %vm1822_vm14, %v2522_v31  ;;  %v4234_v31 = vld [vmem:[%s5514_s9 + $0x30] sm:$0xff]  }
 0x3cf   :  { %2528 = vst.msk [vmem:[#allocation4 + $0x8] sm:$0xff] %vm1822_vm14, %v2520_v50  ;;  %v3972_v5 = vpop.f32.mrb[20].mxu1 }
 0x3d0   :  { %v2517_v6 = vadd.f32 %v3972_v5, %v3599_v26  ;;  %v2481_v49 = vpop.f32.mrb[21].mxu1 }
 0x3d1   :  { %v2515_v30 = vadd.f32 %v3599_v26, %v2481_v49  ;;  %v3973_v10 = vpop.f32.mrb[22].mxu1 }
 0x3d2   :  { %v2525_v4 = vmax.f32 %v2517_v6, 0.0  ;;  %v2518_v56 = vadd.f32 %v3973_v10, %v3599_v26  ;;  %v2484_v52 = vpop.f32.mrb[23].mxu1  ;;  %v4235_v6 = vld [vmem:[%s5514_s9 + $0x38] sm:$0xff]   ;;  %v4236_v10 = vld [vmem:[%s5514_s9 + $0x40] sm:$0xff]  }
 0x3d3   :  { %v2523_v40 = vmax.f32 %v2515_v30, 0.0  ;;  %v2516_v47 = vadd.f32 %v3599_v26, %v2484_v52  ;;  %v4237_v52 = vld [vmem:[%s5514_s9 + $0x48] sm:$0xff]  }
 0x3d4   :  { %2533 = vst.msk [vmem:[#allocation4 + $0x40] sm:$0xff] %vm1822_vm14, %v2525_v4  ;;  %v2526_v13 = vmax.f32 %v2518_v56, 0.0 }
 0x3d5   :  { %2531 = vst.msk [vmem:[#allocation4 + $0x30] sm:$0xff] %vm1822_vm14, %v2523_v40  ;;  %v2524_v53 = vmax.f32 %v2516_v47, 0.0  ;;  %v2553_v38 = vld [vmem:[#allocation4 + $0x19] ss:$3 sm:$0xff]  ;;  %v2541_v8 = vld [vmem:[#allocation4 + $0x18] ss:$3 sm:$0xff] }
 0x3d6   :  { %2534 = vst.msk [vmem:[#allocation4 + $0x48] sm:$0xff] %vm1822_vm14, %v2526_v13  ;;  %v2551_v43 = vld [vmem:[#allocation4 + $0x1] ss:$3 sm:$0xff]  ;;  %v2539_v62 = vld [vmem:[#allocation4] ss:$3 sm:$0xff] }
 0x3d7   :  { %2532 = vst.msk [vmem:[#allocation4 + $0x38] sm:$0xff] %vm1822_vm14, %v2524_v53  ;;  %v2561_v44 = vpack.c.bf16 %v2553_v38, %v2551_v43  ;;  %v2548_v41 = vpack.c.bf16 %v2541_v8, %v2539_v62  ;;  %v2686_v15 = vld [vmem:[#allocation4 + $0x2] ss:$3 sm:$0xff]  ;;  %v2688_v7 = vld [vmem:[#allocation4 + $0x1a] ss:$3 sm:$0xff] }
 0x3d8   :  { %v2696_v1 = vpack.c.bf16 %v2688_v7, %v2686_v15  ;;  %v4238_v53 = vld [vmem:[%s5516_s11] sm:$0xff]   ;;  %v4239_v38 = vld [vmem:[%s5516_s11 + $0x8] sm:$0xff]  }
 0x3d9   :  { %3976 = vmatprep.mubr.msk.bf16.mxu1 %vm1822_vm14, %v2561_v44 }
 0x3dd   :  { %v2557_v29 = vld [vmem:[#allocation4 + $0x49] ss:$3 sm:$0xff]  ;;  %v2545_v20 = vld [vmem:[#allocation4 + $0x48] ss:$3 sm:$0xff]  ;;  %v2692_v42 = vld [vmem:[#allocation4 + $0x4a] ss:$3 sm:$0xff] }
 0x3de   :  { %v2555_v21 = vld [vmem:[#allocation4 + $0x31] ss:$3 sm:$0xff]  ;;  %v2543_v27 = vld [vmem:[#allocation4 + $0x30] ss:$3 sm:$0xff]  ;;  %v2690_v22 = vld [vmem:[#allocation4 + $0x32] ss:$3 sm:$0xff] }
 0x3df   :  { %v2562_v37 = vpack.c.bf16 %v2557_v29, %v2555_v21  ;;  %v2549_v19 = vpack.c.bf16 %v2545_v20, %v2543_v27  ;;  %v2697_v24 = vpack.c.bf16 %v2692_v42, %v2690_v22 }
 0x3e1   :  { %3977 = vmatmul.mubr.msk.bf16.vlgmr.msra.gmra.mrb[24].mxu1 %vm1822_vm14, %v2562_v37 }
 0x3e2   :  { %3981 = vmatpush3.bf16.msra.mxu1 %v4226_v34  ;;  %3982 = vmatprep.mubr.msk.bf16.mxu1 %vm1822_vm14, %v2548_v41  ;;  %v4230_v34 = vld [vmem:[%s5514_s9 + $0x10] sm:$0xff]  }
 0x3e3   :  { %3986 = vmatprep.subr.bf16.mxu1 %v4227_v2 }
 0x3ed   :  { %3983 = vmatmul.mubr.msk.bf16.vlgmr.msra.gmra.mrb[24].mxu1 %vm1822_vm14, %v2549_v19 }
 0x3ee   :  { %3987 = vmatpush3.bf16.msra.mxu1 %v4227_v2  ;;  %3988 = vmatprep.mubr.msk.bf16.mxu1 %vm1822_vm14, %v2696_v1 }
 0x3ef   :  { %3992 = vmatprep.subr.bf16.mxu1 %v4276_v36 }
 0x3f9   :  { %3989 = vmatmul.mubr.msk.bf16.vlgmr.msra.gmra.mrb[24].mxu1 %vm1822_vm14, %v2697_v24 }
 0x3fa   :  { %3994 = vmatprep.mubr.msk.bf16.mxu1 %vm4277_vm15, %v4276_v36  ;;  %3993 = vmatpush3.bf16.msra.mxu1 %v4228_v12 }
 0x3fb   :  { %3998 = vmatprep.subr.bf16.mxu1 %v4276_v36 }
 0x4cc   :  { %v3990_v61 = vpop.f32.mrb[24].mxu1 }
 0x4cd   :  { %v2772_v9 = vadd.f32 %v3990_v61, %v3613_v35  ;;  %v2744_v46 = vpop.f32.mrb[25].mxu1 }
 0x4ce   :  { %v2770_v32 = vadd.f32 %v3613_v35, %v2744_v46  ;;  %v3991_v51 = vpop.f32.mrb[26].mxu1 }
 0x4cf   :  { %v2776_v55 = vmax.f32 %v2772_v9, 0.0  ;;  %v2773_v3 = vadd.f32 %v3991_v51, %v3613_v35  ;;  %v2747_v59 = vpop.f32.mrb[27].mxu1 }
 0x4d0   :  { %v2774_v58 = vmax.f32 %v2770_v32, 0.0  ;;  %v2771_v54 = vadd.f32 %v3613_v35, %v2747_v59 }
 0x4d1   :  { %2780 = vst.msk [vmem:[#allocation5 + $0x10] sm:$0xff] %vm1822_vm14, %v2776_v55  ;;  %v2777_v25 = vmax.f32 %v2773_v3, 0.0 }
 0x4d2   :  { %2778 = vst.msk [vmem:[#allocation5] sm:$0xff] %vm1822_vm14, %v2774_v58  ;;  %v2775_v14 = vmax.f32 %v2771_v54, 0.0 }
 0x4d3   :  { %2781 = vst.msk [vmem:[#allocation5 + $0x18] sm:$0xff] %vm1822_vm14, %v2777_v25 }
 0x4d4   :  { %2779 = vst.msk [vmem:[#allocation5 + $0x8] sm:$0xff] %vm1822_vm14, %v2775_v14 }
 0x4d9   :  { %v2787_v0 = vld [vmem:[#allocation5 + $0x1] ss:$16 sm:$0x3]  ;;  %v2782_v16 = vld [vmem:[#allocation5] ss:$16 sm:$0x3] }
 0x4da   :  { %v2791_v23 = vpack.c.bf16 %v2787_v0, %v2787_v0  ;;  %v2785_v26 = vpack.c.bf16 %v2782_v16, %v2782_v16  ;;  %v2891_v60 = vld [vmem:[#allocation5 + $0x2] ss:$16 sm:$0x3]  ;;  %v2947_v11 = vld [vmem:[#allocation5 + $0x3] ss:$16 sm:$0x3] }
 0x4db   :  { %v2895_v63 = vpack.c.bf16 %v2891_v60, %v2891_v60  ;;  %v2951_v33 = vpack.c.bf16 %v2947_v11, %v2947_v11  ;;  %v3003_v45 = vld [vmem:[#allocation5 + $0x4] ss:$16 sm:$0x3]  ;;  %v3059_v48 = vld [vmem:[#allocation5 + $0x5] ss:$16 sm:$0x3] }
 0x4dc   :  { %3995 = vmatmul.mubr.msk.bf16.vlgmr.msra.gmra.mrb[28].mxu1 %vm1822_vm14, %v2791_v23  ;;  %v3007_v39 = vpack.c.bf16 %v3003_v45, %v3003_v45  ;;  %v3063_v50 = vpack.c.bf16 %v3059_v48, %v3059_v48  ;;  %v3115_v5 = vld [vmem:[#allocation5 + $0x6] ss:$16 sm:$0x3]  ;;  %v3171_v30 = vld [vmem:[#allocation5 + $0x7] ss:$16 sm:$0x3] }
 0x4dd   :  { %3999 = vmatpush3.bf16.msra.mxu1 %v4229_v28  ;;  %4000 = vmatprep.mubr.msk.bf16.mxu1 %vm4277_vm15, %v4276_v36  ;;  %v3119_v49 = vpack.c.bf16 %v3115_v5, %v3115_v5  ;;  %v3175_v4 = vpack.c.bf16 %v3171_v30, %v3171_v30  ;;  %v3227_v56 = vld [vmem:[#allocation5 + $0x8] ss:$16 sm:$0x3]  ;;  %v3283_v47 = vld [vmem:[#allocation5 + $0x9] ss:$16 sm:$0x3] }
 0x4de   :  { %4004 = vmatprep.subr.bf16.mxu1 %v4276_v36  ;;  %v3231_v40 = vpack.c.bf16 %v3227_v56, %v3227_v56  ;;  %v3287_v13 = vpack.c.bf16 %v3283_v47, %v3283_v47  ;;  %v3652_v45 = vld [vmem:[%s5515_s10] ss:$0 sm:$0xff]  ;;  %s4252_s10 = scalar_lea.vmem %s3424_s20, 32 }
 0x4df   :  { %p4253_p0 = scmp.ne.s32.totalorder %s3424_s20, %s4252_s10  ;;  %p4258_p2 = scmp.lt.s32.totalorder %s4252_s10, %s4252_s10 }
 0x4e1   :  { %p4259_p3 = por %p4258_p2, %p4257_p1 }
 0x4e3   :  { %p4260_p4 = pnand %p4259_p3, %p4253_p0 }
 0x4e4   :  { %4001 = vmatmul.mubr.msk.bf16.vlgmr.msra.gmra.mrb[32].mxu1 %vm1822_vm14, %v2785_v26 }
 0x4e5   :  { %4005 = vmatpush3.bf16.msra.mxu1 %v4230_v34  ;;  %4006 = vmatprep.mubr.msk.bf16.mxu1 %vm4277_vm15, %v4276_v36 }
 0x4e6   :  { %4010 = vmatprep.subr.bf16.mxu1 %v4276_v36 }
 0x4ec   :  { %4007 = vmatmul.mubr.msk.bf16.vlgmr.msra.gmra.mrb[36].mxu1 %vm1822_vm14, %v2895_v63 }
 0x4ed   :  { %4011 = vmatpush3.bf16.msra.mxu1 %v4231_v57  ;;  %4012 = vmatprep.mubr.msk.bf16.mxu1 %vm4277_vm15, %v4276_v36 }
 0x4ee   :  { %4016 = vmatprep.subr.bf16.mxu1 %v4276_v36 }
 0x4f4   :  { %4013 = vmatmul.mubr.msk.bf16.vlgmr.msra.gmra.mrb[40].mxu1 %vm1822_vm14, %v2951_v33 }
 0x4f5   :  { %4017 = vmatpush3.bf16.msra.mxu1 %v4232_v18  ;;  %4018 = vmatprep.mubr.msk.bf16.mxu1 %vm4277_vm15, %v4276_v36 }
 0x4f6   :  { %4022 = vmatprep.subr.bf16.mxu1 %v4276_v36 }
 0x4fc   :  { %4019 = vmatmul.mubr.msk.bf16.vlgmr.msra.gmra.mrb[44].mxu1 %vm1822_vm14, %v3007_v39 }
 0x4fd   :  { %4023 = vmatpush3.bf16.msra.mxu1 %v4233_v17  ;;  %4024 = vmatprep.mubr.msk.bf16.mxu1 %vm4277_vm15, %v4276_v36 }
 0x4fe   :  { %4028 = vmatprep.subr.bf16.mxu1 %v4276_v36 }
 0x504   :  { %4025 = vmatmul.mubr.msk.bf16.vlgmr.msra.gmra.mrb[48].mxu1 %vm1822_vm14, %v3063_v50 }
 0x505   :  { %4029 = vmatpush3.bf16.msra.mxu1 %v4234_v31  ;;  %4030 = vmatprep.mubr.msk.bf16.mxu1 %vm4277_vm15, %v4276_v36 }
 0x506   :  { %4034 = vmatprep.subr.bf16.mxu1 %v4276_v36 }
 0x50c   :  { %4031 = vmatmul.mubr.msk.bf16.vlgmr.msra.gmra.mrb[52].mxu1 %vm1822_vm14, %v3119_v49  ;;  %v3653_v49 = vld [vmem:[%s5517_s12] ss:$0 sm:$0xff] }
 0x50d   :  { %4035 = vmatpush3.bf16.msra.mxu1 %v4235_v6  ;;  %4036 = vmatprep.mubr.msk.bf16.mxu1 %vm4277_vm15, %v4276_v36 }
 0x50e   :  { %4040 = vmatprep.subr.bf16.mxu1 %v4276_v36 }
 0x514   :  { %4037 = vmatmul.mubr.msk.bf16.vlgmr.msra.gmra.mrb[56].mxu1 %vm1822_vm14, %v3175_v4 }
 0x515   :  { %4041 = vmatpush3.bf16.msra.mxu1 %v4236_v10  ;;  %4042 = vmatprep.mubr.msk.bf16.mxu1 %vm4277_vm15, %v4276_v36 }
 0x516   :  { %4046 = vmatprep.subr.bf16.mxu1 %v4276_v36 }
 0x51c   :  { %4043 = vmatmul.mubr.msk.bf16.vlgmr.msra.gmra.mrb[60].mxu1 %vm1822_vm14, %v3231_v40 }
 0x51d   :  { %4047 = vmatpush3.bf16.msra.mxu1 %v4237_v52  ;;  %4048 = vmatprep.mubr.msk.bf16.mxu1 %vm4277_vm15, %v4276_v36 }
 0x51e   :  { %4052 = vmatprep.subr.bf16.mxu1 %v4276_v36 }
 0x524   :  { %4049 = vmatmul.mubr.msk.bf16.vlgmr.msra.gmra.mrb[64].mxu1 %vm1822_vm14, %v3287_v13 }
 0x525   :  { %4056 = vmatprep.mubr.msk.bf16.mxu1 %vm4277_vm15, %v4276_v36  ;;  %4053 = vmatpush3.bf16.msra.mxu1 %v4238_v53 }
 0x526   :  { %4054 = vmatprep.subr.bf16.mxu1 %v4276_v36 }
 0x529   :  { %4055 = vmatpush3.bf16.msra.mxu1 %v4239_v38 }
 0x5af   :  { %v2835_v43 = vpop.f32.mrb[28].mxu1 }
 0x5b0   :  { %v3996_v44 = vpop.f32.mrb[29].mxu1 }
 0x5b1   :  { %v2838_v29 = vpop.f32.mrb[30].mxu1 }
 0x5b2   :  { %v3997_v62 = vpop.f32.mrb[31].mxu1 }
 0x5b7   :  { %v2884_v8 = vpop.f32.mrb[32].mxu1 }
 0x5b8   :  { %v2885_v21 = vadd.f32 %v2884_v8, %v2835_v43  ;;  %v4002_v37 = vpop.f32.mrb[33].mxu1 }
 0x5b9   :  { %v2887_v2 = vpop.f32.mrb[34].mxu1 }
 0x5ba   :  { %v4003_v41 = vpop.f32.mrb[35].mxu1 }
 0x5bf   :  { %v2939_v27 = vpop.f32.mrb[36].mxu1 }
 0x5c0   :  { %v2945_v20 = vadd.f32 %v2939_v27, %v2885_v21  ;;  %v4008_v15 = vpop.f32.mrb[37].mxu1 }
 0x5c1   :  { %v2942_v7 = vpop.f32.mrb[38].mxu1 }
 0x5c2   :  { %v4009_v19 = vpop.f32.mrb[39].mxu1 }
 0x5c7   :  { %v2995_v36 = vpop.f32.mrb[40].mxu1 }
 0x5c8   :  { %v3001_v1 = vadd.f32 %v2995_v36, %v2945_v20  ;;  %v4014_v22 = vpop.f32.mrb[41].mxu1 }
 0x5c9   :  { %v2998_v42 = vpop.f32.mrb[42].mxu1 }
 0x5ca   :  { %v4015_v24 = vpop.f32.mrb[43].mxu1 }
 0x5cf   :  { %v3051_v12 = vpop.f32.mrb[44].mxu1 }
 0x5d0   :  { %v3057_v35 = vadd.f32 %v3051_v12, %v3001_v1  ;;  %v4020_v61 = vpop.f32.mrb[45].mxu1 }
 0x5d1   :  { %v3054_v9 = vpop.f32.mrb[46].mxu1 }
 0x5d2   :  { %v4021_v46 = vpop.f32.mrb[47].mxu1 }
 0x5d7   :  { %v3107_v32 = vpop.f32.mrb[48].mxu1 }
 0x5d8   :  { %v3113_v51 = vadd.f32 %v3107_v32, %v3057_v35  ;;  %v4026_v55 = vpop.f32.mrb[49].mxu1 }
 0x5d9   :  { %v3110_v3 = vpop.f32.mrb[50].mxu1 }
 0x5da   :  { %v4027_v59 = vpop.f32.mrb[51].mxu1 }
 0x5df   :  { %v3163_v58 = vpop.f32.mrb[52].mxu1 }
 0x5e0   :  { %v3169_v54 = vadd.f32 %v3163_v58, %v3113_v51  ;;  %v4032_v25 = vpop.f32.mrb[53].mxu1 }
 0x5e1   :  { %v3166_v14 = vpop.f32.mrb[54].mxu1 }
 0x5e2   :  { %v4033_v0 = vpop.f32.mrb[55].mxu1 }
 0x5e7   :  { %v3219_v28 = vpop.f32.mrb[56].mxu1 }
 0x5e8   :  { %v3225_v23 = vadd.f32 %v3219_v28, %v3169_v54  ;;  %v4038_v16 = vpop.f32.mrb[57].mxu1 }
 0x5e9   :  { %v3222_v34 = vpop.f32.mrb[58].mxu1 }
 0x5ea   :  { %v4039_v26 = vpop.f32.mrb[59].mxu1 }
 0x5ef   :  { %v3275_v60 = vpop.f32.mrb[60].mxu1 }
 0x5f0   :  { %v3281_v57 = vadd.f32 %v3275_v60, %v3225_v23  ;;  %v4044_v63 = vpop.f32.mrb[61].mxu1 }
 0x5f1   :  { %v3278_v11 = vpop.f32.mrb[62].mxu1 }
 0x5f2   :  { %v4045_v18 = vpop.f32.mrb[63].mxu1 }
 0x5f7   :  { %v3331_v33 = vpop.f32.mrb[64].mxu1 }
 0x5f8   :  { %v3337_v17 = vadd.f32 %v3331_v33, %v3281_v57  ;;  %v4050_v39 = vpop.f32.mrb[65].mxu1 }
 0x5f9   :  { %v3334_v48 = vpop.f32.mrb[66].mxu1 }
 0x5fa   :  { %v3345_v31 = vadd.f32 %v3652_v45, %v3337_v17  ;;  %v4051_v50 = vpop.f32.mrb[67].mxu1 }
 0x5fc   :  { %v3346_v5 = vmax.f32 %v3345_v31, 0.0 }
 0x5fe   :  { %v3351_v6 = vpack.c.bf16 %v3346_v5, %v3346_v5 }
 0x600   :  { %4057 = vmatmul.mubr.msk.bf16.vlgmr.msra.gmra.mrb[68].mxu1 %vm3371_vm0, %v3351_v6 }
 0x6d3   :  { %v3409_v30 = vpop.f32.mrb[68].mxu1 }
 0x6d4   :  { %v3410_v10 = vadd.f32 %v3653_v49, %v3409_v30  ;;  %v4058_v4 = vpop.f32.mrb[69].mxu1 }
 0x6d5   :  { %v3412_v56 = vpop.f32.mrb[70].mxu1 }
 0x6d6   :  { %v4059_v52 = vpop.f32.mrb[71].mxu1  ;;  %3416 = vst.msk [vmem:[#allocation6] sm:$0x3] %vm3415_vm1, %v3410_v10 }
 0x6d7   :  { %4263 = shalt.err (!%p4260_p4)
}
 0x6d8   :  { %s4264_s12 = scalar_lea.hbm %s5518_s13, 32 }
 0x6d9   :  { %p4265_p5 = scmp.ne.s32.totalorder %s5518_s13, %s4264_s12  ;;  %p4268_p6 = scmp.lt.u32.totalorder %s4264_s12, %s5518_s13 }
 0x6db   :  { %p4270_p7 = pnand %p4268_p6, %p4265_p5 }
 0x6dd   :  { %4273 = shalt.err (!%p4270_p7)
}
 0x6de   :  { %3426 = dma.vmem_to_hbm [thread:$0]  %s3424_s20, 32, %s5518_s13, [#allocation7]  }
 0x6df   :  { %4274 = dma.done.wait [#allocation7], 32  }
 0x6e0   :  { %4275 = vsyncadd [#allocation7], 4294967264 }
 0x6e1   :  { %3430 = vsyncpa [#allocation7], 1 }

</bundles_post_ra>
